<compile_context>
chip_gen: v7x
topology: tpu7x:2x2x1
jax: 0.10.0
libtpu: 0.0.40
codegen_flags: <defaults>
</compile_context>

<pallas_src>
import functools

import jax
import jax.numpy as jnp
from jax import lax
from jax.experimental import pallas as pl
from jax.experimental.pallas import tpu as pltpu


def _block_kernel(x_ref, gamma_ref, beta_ref, mt_ref, m_ref, w_ref, bias_ref,
                  mask_ref, o_ref, vp_ref, *, H, W, C, G, eps):
    """One batch image per grid step: GroupNorm -> SiLU -> 3x3 conv."""
    P = H * W
    cnt = float((C // G) * P)

    x = x_ref[0]                                                 # (P, C) f32

    # ---------------- GroupNorm: single stats pass ---------------------------
    s1 = jnp.sum(x, axis=0, keepdims=True)                       # (1, C) sum x
    s2 = jnp.sum(x * x, axis=0, keepdims=True)                   # (1, C) sum x^2
    per_c = jnp.concatenate([s1, s2], axis=0)                    # (2, C)
    per_g = jnp.dot(per_c, mt_ref[...],
                    preferred_element_type=jnp.float32) / cnt    # (2, G)
    mean_g = per_g[0:1]
    var_g = per_g[1:2] - mean_g * mean_g
    inv_g = lax.rsqrt(var_g + eps)
    back = jnp.dot(jnp.concatenate([mean_g, inv_g], axis=0), m_ref[...],
                   preferred_element_type=jnp.float32)           # (2, C)
    scale = back[1:2] * gamma_ref[...]                           # (1, C)
    shift = beta_ref[...] - back[0:1] * scale                    # (1, C)

    # ---------------- normalize + SiLU (fused single pass) -------------------
    y = x * scale + shift
    y = y * pl.reciprocal(1.0 + jnp.exp(-y), approx=True)

    # ---------------- Dropout2d ----------------------------------------------
    # TODO(synk): training-mode Dropout2d (per-channel Bernoulli zeroing with
    # 1/(1-p) rescale) is not implemented; eval-mode (identity) semantics used.

    # ---------------- Conv2d (C -> Cout_pad, k=3, s=1, p=1) ------------------
    # Horizontal neighbours via sublane roll + boundary mask (all still in
    # value space), stored as [left | center | right] lanes of a vertically
    # zero-padded scratch.  Vertical taps are leading-offset slices.
    sdt = vp_ref.dtype
    left = pltpu.roll(y, shift=1, axis=0) * mask_ref[:, 0:1]      # act[h, w-1]
    right = pltpu.roll(y, shift=P - 1, axis=0) * mask_ref[:, 1:2] # act[h, w+1]

    vp_ref[0:W, :] = jnp.zeros((W, 3 * C), sdt)                   # top pad row
    vp_ref[(H + 1) * W:(H + 2) * W, :] = jnp.zeros((W, 3 * C), sdt)
    vp_ref[W:W + P, 0:C] = left.astype(sdt)
    vp_ref[W:W + P, C:2 * C] = y.astype(sdt)
    vp_ref[W:W + P, 2 * C:3 * C] = right.astype(sdt)

    # Three accumulating MXU matmuls with K = 3C, f32 accumulation.
    acc = jnp.zeros((P, w_ref.shape[2]), jnp.float32)
    for ky in range(3):
        tap = vp_ref[ky * W:ky * W + P, :].astype(jnp.bfloat16)   # (P, 3C)
        acc = acc + jnp.dot(tap, w_ref[ky],
                            preferred_element_type=jnp.float32)   # (P, Cout_pad)
    o_ref[0] = acc + bias_ref[...]


def block_forward(x_nchw, gamma, beta, conv_w, conv_b, *, groups=8, eps=1e-5):
    """Forward pass of `Block` (eval mode). Input/output are NCHW like PyTorch."""
    N, C, H, W = x_nchw.shape
    Cout = conv_w.shape[0]
    assert C % groups == 0
    P = H * W
    G = groups
    # Lane-dense output: pad Cout up to a multiple of 128 (zero weight / bias
    # columns) so the output store is an unmasked vst; sliced off afterwards.
    Cp = ((Cout + 127) // 128) * 128

    # ---- glue: layout conversion + parameter packing (plain JAX) ----
    # TODO(synk): drop the NCHW<->NHWC transposes if the surrounding model is
    # NHWC end-to-end; stream x/out as bf16 on memory-bound chips (v5e) if the
    # consumer tolerates it.
    x_npc = jnp.transpose(x_nchw, (0, 2, 3, 1)).reshape(N, P, C).astype(jnp.float32)

    # conv weight -> (ky, kx*C + cin, cout_padded), bf16 for the MXU.
    w3 = jnp.transpose(conv_w, (2, 3, 1, 0)).reshape(3, 3 * C, Cout)
    w3 = jnp.pad(w3, ((0, 0), (0, 0), (0, Cp - Cout))).astype(jnp.bfloat16)
    bias2 = jnp.pad(conv_b, (0, Cp - Cout)).reshape(1, Cp).astype(jnp.float32)
    gamma2 = gamma.reshape(1, C).astype(jnp.float32)
    beta2 = beta.reshape(1, C).astype(jnp.float32)

    # 0/1 channel<->group membership matrices for folding the stats.
    gid = jnp.arange(C) // (C // G)
    M = (jnp.arange(G)[:, None] == gid[None, :]).astype(jnp.float32)   # (G, C)
    Mt = jnp.transpose(M)                                              # (C, G)

    # Horizontal-boundary masks: col 0 kills w==0 rows (left neighbour),
    # col 1 kills w==W-1 rows (right neighbour).
    w_idx = jnp.arange(P, dtype=jnp.int32) % W
    masks = jnp.stack([(w_idx != 0).astype(jnp.float32),
                       (w_idx != W - 1).astype(jnp.float32)], axis=1)  # (P, 2)

    # bf16 scratch needs even sublane offsets (W even); otherwise fall back to f32.
    sdtype = jnp.bfloat16 if W % 2 == 0 else jnp.float32

    # VMEM budget derived from the actual block sizes (x/out double-buffered),
    # clamped to the smallest physical VMEM across generations (v7x: 64 MiB).
    need = (2 * P * C * 4 + 2 * P * Cp * 4 + 2 * 9 * C * Cp * 2
            + (H + 2) * W * 3 * C * jnp.dtype(sdtype).itemsize + (1 << 20))
    vmem_limit = int(min(max(2 * need, 32 * 1024 * 1024), 64 * 1024 * 1024))

    kernel = functools.partial(_block_kernel, H=H, W=W, C=C, G=G, eps=eps)

    out_npc = pl.pallas_call(
        kernel,
        out_shape=jax.ShapeDtypeStruct((N, P, Cp), jnp.float32),
        grid_spec=pltpu.PrefetchScalarGridSpec(
            num_scalar_prefetch=0,
            grid=(N,),
            in_specs=[
                pl.BlockSpec((1, P, C), lambda n: (n, 0, 0)),      # x
                pl.BlockSpec((1, C), lambda n: (0, 0)),            # gamma
                pl.BlockSpec((1, C), lambda n: (0, 0)),            # beta
                pl.BlockSpec((C, G), lambda n: (0, 0)),            # M^T (ch->grp)
                pl.BlockSpec((G, C), lambda n: (0, 0)),            # M   (grp->ch)
                pl.BlockSpec((3, 3 * C, Cp), lambda n: (0, 0, 0)), # conv weight
                pl.BlockSpec((1, Cp), lambda n: (0, 0)),           # conv bias
                pl.BlockSpec((P, 2), lambda n: (0, 0)),            # boundary masks
            ],
            out_specs=pl.BlockSpec((1, P, Cp), lambda n: (n, 0, 0)),
            scratch_shapes=[pltpu.VMEM(((H + 2) * W, 3 * C), sdtype)],
        ),
        compiler_params=pltpu.CompilerParams(
            dimension_semantics=("parallel",),       # batch items independent
            vmem_limit_bytes=vmem_limit),
    )(x_npc, gamma2, beta2, Mt, M, w3, bias2, masks)

    # ---- glue: drop Cout padding, back to NCHW ----
    out_npc = out_npc[:, :, :Cout]
    return jnp.transpose(out_npc.reshape(N, H, W, Cout), (0, 3, 1, 2))


def _reference_forward(x, gamma, beta, conv_w, conv_b, *, groups=8, eps=1e-5):
    """Pure-JAX reference mirroring the PyTorch module (eval mode)."""
    N, C, H, W = x.shape
    G = groups
    xg = x.reshape(N, G, C // G, H, W)
    mean = xg.mean(axis=(2, 3, 4), keepdims=True)
    var = xg.var(axis=(2, 3, 4), keepdims=True)
    xn = ((xg - mean) / jnp.sqrt(var + eps)).reshape(N, C, H, W)
    xn = xn * gamma[None, :, None, None] + beta[None, :, None, None]
    a = xn * jax.nn.sigmoid(xn)
    out = lax.conv_general_dilated(
        a, conv_w, window_strides=(1, 1), padding=((1, 1), (1, 1)),
        dimension_numbers=("NCHW", "OIHW", "NCHW"),
        precision=lax.Precision.HIGHEST)
    return out + conv_b[None, :, None, None]


if __name__ == "__main__":
    N, C, Cout, H, W, G = 2, 16, 32, 16, 16, 8
    key = jax.random.PRNGKey(0)
    kx, kg, kb, kw, kc = jax.random.split(key, 5)
    x = jax.random.normal(kx, (N, C, H, W), jnp.float32)
    gamma = 1.0 + 0.1 * jax.random.normal(kg, (C,), jnp.float32)
    beta = 0.1 * jax.random.normal(kb, (C,), jnp.float32)
    conv_w = 0.05 * jax.random.normal(kw, (Cout, C, 3, 3), jnp.float32)
    conv_b = 0.05 * jax.random.normal(kc, (Cout,), jnp.float32)

    out = block_forward(x, gamma, beta, conv_w, conv_b, groups=G)
    out = jax.block_until_ready(out)

    ref = _reference_forward(x, gamma, beta, conv_w, conv_b, groups=G)
    max_err = float(jnp.max(jnp.abs(out - ref)))
    assert out.shape == (N, Cout, H, W), out.shape
    assert max_err < 3e-2, f"max abs error {max_err}"
    print("KERNEL_OK")
</pallas_src>

<mosaic_0001>
module attributes {stable_mosaic.version = 11 : i64} {
  func.func @_block_kernel(%arg0: i32, %arg1: memref<1x256x16xf32, #tpu.memory_space<vmem>>, %arg2: memref<1x16xf32, #tpu.memory_space<vmem>>, %arg3: memref<1x16xf32, #tpu.memory_space<vmem>>, %arg4: memref<16x8xf32, #tpu.memory_space<vmem>>, %arg5: memref<8x16xf32, #tpu.memory_space<vmem>>, %arg6: memref<3x48x128xbf16, #tpu.memory_space<vmem>>, %arg7: memref<1x128xf32, #tpu.memory_space<vmem>>, %arg8: memref<256x2xf32, #tpu.memory_space<vmem>>, %arg9: memref<1x256x128xf32, #tpu.memory_space<vmem>>, %arg10: memref<288x48xbf16, #tpu.memory_space<vmem>>) attributes {dimension_semantics = [#tpu.dimension_semantics<parallel>], iteration_bounds = array<i64: 2>, scalar_prefetch = 0 : i64, scratch_operands = 1 : i64, tpu.core_type = #tpu.core_type<tc>, window_params = [{transform_indices = @transform_0, window_bounds = array<i64: 1, 256, 16>}, {pipeline_mode = #tpu.pipeline_mode<synchronous>, transform_indices = @transform_1, window_bounds = array<i64: 1, 16>}, {pipeline_mode = #tpu.pipeline_mode<synchronous>, transform_indices = @transform_2, window_bounds = array<i64: 1, 16>}, {pipeline_mode = #tpu.pipeline_mode<synchronous>, transform_indices = @transform_3, window_bounds = array<i64: 16, 8>}, {pipeline_mode = #tpu.pipeline_mode<synchronous>, transform_indices = @transform_4, window_bounds = array<i64: 8, 16>}, {pipeline_mode = #tpu.pipeline_mode<synchronous>, transform_indices = @transform_5, window_bounds = array<i64: 3, 48, 128>}, {pipeline_mode = #tpu.pipeline_mode<synchronous>, transform_indices = @transform_6, window_bounds = array<i64: 1, 128>}, {pipeline_mode = #tpu.pipeline_mode<synchronous>, transform_indices = @transform_7, window_bounds = array<i64: 256, 2>}, {transform_indices = @transform_8, window_bounds = array<i64: 1, 256, 128>}]} {
    %c0 = arith.constant 0 : index
    %c0_0 = arith.constant 0 : index
    %c0_1 = arith.constant 0 : index
    %0 = vector.load %arg1[%c0, %c0_0, %c0_1] : memref<1x256x16xf32, #tpu.memory_space<vmem>>, vector<1x256x16xf32>
    %1 = vector.shape_cast %0 : vector<1x256x16xf32> to vector<256x16xf32>
    %cst = arith.constant dense<0.000000e+00> : vector<16xf32>
    %2 = vector.multi_reduction <add>, %1, %cst [0] : vector<256x16xf32> to vector<16xf32>
    %3 = vector.shape_cast %2 : vector<16xf32> to vector<1x16xf32>
    %4 = arith.mulf %1, %1 : vector<256x16xf32>
    %cst_2 = arith.constant dense<0.000000e+00> : vector<16xf32>
    %5 = vector.multi_reduction <add>, %4, %cst_2 [0] : vector<256x16xf32> to vector<16xf32>
    %6 = vector.shape_cast %5 : vector<16xf32> to vector<1x16xf32>
    %7 = tpu.concatenate %3, %6 in 0 : vector<1x16xf32>, vector<1x16xf32> -> vector<2x16xf32>
    %c0_3 = arith.constant 0 : index
    %c0_4 = arith.constant 0 : index
    %8 = vector.load %arg4[%c0_3, %c0_4] : memref<16x8xf32, #tpu.memory_space<vmem>>, vector<16x8xf32>
    %cst_5 = arith.constant dense<0.000000e+00> : vector<2x8xf32>
    %9 = tpu.matmul %7, %8, %cst_5 {dimension_numbers = #tpu.dot_dimension_numbers<[1], [0], [0], [1], [0, 0, 1, 1], [], []>} : vector<2x16xf32>, vector<16x8xf32>, vector<2x8xf32> -> vector<2x8xf32>
    %cst_6 = arith.constant 5.120000e+02 : f32
    %10 = vector.broadcast %cst_6 : f32 to vector<2x8xf32>
    %11 = arith.divf %9, %10 : vector<2x8xf32>
    %12 = vector.extract_strided_slice %11 {offsets = [0, 0], sizes = [1, 8], strides = [1, 1]} : vector<2x8xf32> to vector<1x8xf32>
    %13 = vector.extract_strided_slice %11 {offsets = [1, 0], sizes = [1, 8], strides = [1, 1]} : vector<2x8xf32> to vector<1x8xf32>
    %14 = arith.mulf %12, %12 : vector<1x8xf32>
    %15 = arith.subf %13, %14 : vector<1x8xf32>
    %cst_7 = arith.constant 9.99999974E-6 : f32
    %16 = vector.broadcast %cst_7 : f32 to vector<1x8xf32>
    %17 = arith.addf %15, %16 : vector<1x8xf32>
    %18 = math.rsqrt %17 : vector<1x8xf32>
    %19 = tpu.concatenate %12, %18 in 0 : vector<1x8xf32>, vector<1x8xf32> -> vector<2x8xf32>
    %c0_8 = arith.constant 0 : index
    %c0_9 = arith.constant 0 : index
    %20 = vector.load %arg5[%c0_8, %c0_9] : memref<8x16xf32, #tpu.memory_space<vmem>>, vector<8x16xf32>
    %cst_10 = arith.constant dense<0.000000e+00> : vector<2x16xf32>
    %21 = tpu.matmul %19, %20, %cst_10 {dimension_numbers = #tpu.dot_dimension_numbers<[1], [0], [0], [1], [0, 0, 1, 1], [], []>} : vector<2x8xf32>, vector<8x16xf32>, vector<2x16xf32> -> vector<2x16xf32>
    %22 = vector.extract_strided_slice %21 {offsets = [1, 0], sizes = [1, 16], strides = [1, 1]} : vector<2x16xf32> to vector<1x16xf32>
    %c0_11 = arith.constant 0 : index
    %c0_12 = arith.constant 0 : index
    %23 = vector.load %arg2[%c0_11, %c0_12] : memref<1x16xf32, #tpu.memory_space<vmem>>, vector<1x16xf32>
    %24 = arith.mulf %22, %23 : vector<1x16xf32>
    %c0_13 = arith.constant 0 : index
    %c0_14 = arith.constant 0 : index
    %25 = vector.load %arg3[%c0_13, %c0_14] : memref<1x16xf32, #tpu.memory_space<vmem>>, vector<1x16xf32>
    %26 = vector.extract_strided_slice %21 {offsets = [0, 0], sizes = [1, 16], strides = [1, 1]} : vector<2x16xf32> to vector<1x16xf32>
    %27 = arith.mulf %26, %24 : vector<1x16xf32>
    %28 = arith.subf %25, %27 : vector<1x16xf32>
    %29 = vector.broadcast %24 : vector<1x16xf32> to vector<256x16xf32>
    %30 = arith.mulf %1, %29 : vector<256x16xf32>
    %31 = vector.broadcast %28 : vector<1x16xf32> to vector<256x16xf32>
    %32 = arith.addf %30, %31 : vector<256x16xf32>
    %cst_15 = arith.constant 0.000000e+00 : f32
    %33 = vector.broadcast %cst_15 : f32 to vector<256x16xf32>
    %34 = arith.subf %33, %32 : vector<256x16xf32>
    %35 = math.exp %34 : vector<256x16xf32>
    %cst_16 = arith.constant 1.000000e+00 : f32
    %36 = vector.broadcast %cst_16 : f32 to vector<256x16xf32>
    %37 = arith.addf %36, %35 : vector<256x16xf32>
    %38 = tpu.reciprocal %37 {approx = true} : vector<256x16xf32> -> vector<256x16xf32>
    %39 = arith.mulf %32, %38 : vector<256x16xf32>
    %c1_i32 = arith.constant 1 : i32
    %40 = tpu.dynamic_rotate %39 by %c1_i32 dim 0 : vector<256x16xf32>, i32 -> vector<256x16xf32>
    %c0_17 = arith.constant 0 : index
    %c0_18 = arith.constant 0 : index
    %41 = vector.load %arg8[%c0_17, %c0_18] : memref<256x2xf32, #tpu.memory_space<vmem>>, vector<256x1xf32>
    %42 = vector.broadcast %41 : vector<256x1xf32> to vector<256x16xf32>
    %43 = arith.mulf %40, %42 : vector<256x16xf32>
    %c255_i32 = arith.constant 255 : i32
    %44 = tpu.dynamic_rotate %39 by %c255_i32 dim 0 : vector<256x16xf32>, i32 -> vector<256x16xf32>
    %c0_19 = arith.constant 0 : index
    %c1 = arith.constant 1 : index
    %45 = vector.load %arg8[%c0_19, %c1] : memref<256x2xf32, #tpu.memory_space<vmem>>, vector<256x1xf32>
    %46 = vector.broadcast %45 : vector<256x1xf32> to vector<256x16xf32>
    %47 = arith.mulf %44, %46 : vector<256x16xf32>
    %cst_20 = arith.constant 0.000000e+00 : bf16
    %48 = vector.broadcast %cst_20 : bf16 to vector<16x48xbf16>
    %c0_21 = arith.constant 0 : index
    %c0_22 = arith.constant 0 : index
    %49 = vector.load %arg10[%c0_21, %c0_22] : memref<288x48xbf16, #tpu.memory_space<vmem>>, vector<16x48xbf16>
    tpu.vector_store %arg10[%c0_21, %c0_22], %48 {strides = array<i32>} : memref<288x48xbf16, #tpu.memory_space<vmem>>, vector<16x48xbf16>,
    %cst_23 = arith.constant 0.000000e+00 : bf16
    %50 = vector.broadcast %cst_23 : bf16 to vector<16x48xbf16>
    %c272 = arith.constant 272 : index
    %c0_24 = arith.constant 0 : index
    %51 = vector.load %arg10[%c272, %c0_24] : memref<288x48xbf16, #tpu.memory_space<vmem>>, vector<16x48xbf16>
    tpu.vector_store %arg10[%c272, %c0_24], %50 {strides = array<i32>} : memref<288x48xbf16, #tpu.memory_space<vmem>>, vector<16x48xbf16>,
    %52 = arith.truncf %43 : vector<256x16xf32> to vector<256x16xbf16>
    %c16 = arith.constant 16 : index
    %c0_25 = arith.constant 0 : index
    %53 = vector.load %arg10[%c16, %c0_25] : memref<288x48xbf16, #tpu.memory_space<vmem>>, vector<256x16xbf16>
    tpu.vector_store %arg10[%c16, %c0_25], %52 {strides = array<i32>} : memref<288x48xbf16, #tpu.memory_space<vmem>>, vector<256x16xbf16>,
    %54 = arith.truncf %39 : vector<256x16xf32> to vector<256x16xbf16>
    %c16_26 = arith.constant 16 : index
    %c16_27 = arith.constant 16 : index
    %55 = vector.load %arg10[%c16_26, %c16_27] : memref<288x48xbf16, #tpu.memory_space<vmem>>, vector<256x16xbf16>
    tpu.vector_store %arg10[%c16_26, %c16_27], %54 {strides = array<i32>} : memref<288x48xbf16, #tpu.memory_space<vmem>>, vector<256x16xbf16>,
    %56 = arith.truncf %47 : vector<256x16xf32> to vector<256x16xbf16>
    %c16_28 = arith.constant 16 : index
    %c32 = arith.constant 32 : index
    %57 = vector.load %arg10[%c16_28, %c32] : memref<288x48xbf16, #tpu.memory_space<vmem>>, vector<256x16xbf16>
    tpu.vector_store %arg10[%c16_28, %c32], %56 {strides = array<i32>} : memref<288x48xbf16, #tpu.memory_space<vmem>>, vector<256x16xbf16>,
    %cst_29 = arith.constant 0.000000e+00 : f32
    %58 = vector.broadcast %cst_29 : f32 to vector<256x128xf32>
    %c0_30 = arith.constant 0 : index
    %c0_31 = arith.constant 0 : index
    %59 = vector.load %arg10[%c0_30, %c0_31] : memref<288x48xbf16, #tpu.memory_space<vmem>>, vector<256x48xbf16>
    %c0_32 = arith.constant 0 : index
    %c0_33 = arith.constant 0 : index
    %c0_34 = arith.constant 0 : index
    %60 = vector.load %arg6[%c0_32, %c0_33, %c0_34] : memref<3x48x128xbf16, #tpu.memory_space<vmem>>, vector<1x48x128xbf16>
    %61 = vector.shape_cast %60 : vector<1x48x128xbf16> to vector<48x128xbf16>
    %cst_35 = arith.constant dense<0.000000e+00> : vector<256x128xf32>
    %62 = tpu.matmul %59, %61, %cst_35 {dimension_numbers = #tpu.dot_dimension_numbers<[1], [0], [0], [1], [0, 0, 1, 1], [], []>} : vector<256x48xbf16>, vector<48x128xbf16>, vector<256x128xf32> -> vector<256x128xf32>
    %63 = arith.addf %58, %62 : vector<256x128xf32>
    %c16_36 = arith.constant 16 : index
    %c0_37 = arith.constant 0 : index
    %64 = vector.load %arg10[%c16_36, %c0_37] : memref<288x48xbf16, #tpu.memory_space<vmem>>, vector<256x48xbf16>
    %c1_38 = arith.constant 1 : index
    %c0_39 = arith.constant 0 : index
    %c0_40 = arith.constant 0 : index
    %65 = vector.load %arg6[%c1_38, %c0_39, %c0_40] : memref<3x48x128xbf16, #tpu.memory_space<vmem>>, vector<1x48x128xbf16>
    %66 = vector.shape_cast %65 : vector<1x48x128xbf16> to vector<48x128xbf16>
    %cst_41 = arith.constant dense<0.000000e+00> : vector<256x128xf32>
    %67 = tpu.matmul %64, %66, %cst_41 {dimension_numbers = #tpu.dot_dimension_numbers<[1], [0], [0], [1], [0, 0, 1, 1], [], []>} : vector<256x48xbf16>, vector<48x128xbf16>, vector<256x128xf32> -> vector<256x128xf32>
    %68 = arith.addf %63, %67 : vector<256x128xf32>
    %c32_42 = arith.constant 32 : index
    %c0_43 = arith.constant 0 : index
    %69 = vector.load %arg10[%c32_42, %c0_43] : memref<288x48xbf16, #tpu.memory_space<vmem>>, vector<256x48xbf16>
    %c2 = arith.constant 2 : index
    %c0_44 = arith.constant 0 : index
    %c0_45 = arith.constant 0 : index
    %70 = vector.load %arg6[%c2, %c0_44, %c0_45] : memref<3x48x128xbf16, #tpu.memory_space<vmem>>, vector<1x48x128xbf16>
    %71 = vector.shape_cast %70 : vector<1x48x128xbf16> to vector<48x128xbf16>
    %cst_46 = arith.constant dense<0.000000e+00> : vector<256x128xf32>
    %72 = tpu.matmul %69, %71, %cst_46 {dimension_numbers = #tpu.dot_dimension_numbers<[1], [0], [0], [1], [0, 0, 1, 1], [], []>} : vector<256x48xbf16>, vector<48x128xbf16>, vector<256x128xf32> -> vector<256x128xf32>
    %73 = arith.addf %68, %72 : vector<256x128xf32>
    %c0_47 = arith.constant 0 : index
    %c0_48 = arith.constant 0 : index
    %74 = vector.load %arg7[%c0_47, %c0_48] : memref<1x128xf32, #tpu.memory_space<vmem>>, vector<1x128xf32>
    %75 = vector.broadcast %74 : vector<1x128xf32> to vector<256x128xf32>
    %76 = arith.addf %73, %75 : vector<256x128xf32>
    %c0_49 = arith.constant 0 : index
    %c0_50 = arith.constant 0 : index
    %c0_51 = arith.constant 0 : index
    %77 = vector.load %arg9[%c0_49, %c0_50, %c0_51] : memref<1x256x128xf32, #tpu.memory_space<vmem>>, vector<1x256x128xf32>
    %78 = vector.shape_cast %77 : vector<1x256x128xf32> to vector<256x128xf32>
    %79 = vector.shape_cast %76 : vector<256x128xf32> to vector<1x256x128xf32>
    tpu.vector_store %arg9[%c0_49, %c0_50, %c0_51], %79 {strides = array<i32>} : memref<1x256x128xf32, #tpu.memory_space<vmem>>, vector<1x256x128xf32>,
    return
  }
  func.func @transform_0(%arg0: i32) -> (i32, i32, i32) {
    %c0_i32 = arith.constant 0 : i32
    %c0_i32_0 = arith.constant 0 : i32
    %c0_i32_1 = arith.constant 0 : i32
    return %arg0, %c0_i32, %c0_i32_0 : i32, i32, i32
  }
  func.func @transform_1(%arg0: i32) -> (i32, i32) {
    %c0_i32 = arith.constant 0 : i32
    %c0_i32_0 = arith.constant 0 : i32
    %c0_i32_1 = arith.constant 0 : i32
    return %c0_i32, %c0_i32_0 : i32, i32
  }
  func.func @transform_2(%arg0: i32) -> (i32, i32) {
    %c0_i32 = arith.constant 0 : i32
    %c0_i32_0 = arith.constant 0 : i32
    %c0_i32_1 = arith.constant 0 : i32
    return %c0_i32, %c0_i32_0 : i32, i32
  }
  func.func @transform_3(%arg0: i32) -> (i32, i32) {
    %c0_i32 = arith.constant 0 : i32
    %c0_i32_0 = arith.constant 0 : i32
    %c0_i32_1 = arith.constant 0 : i32
    return %c0_i32, %c0_i32_0 : i32, i32
  }
  func.func @transform_4(%arg0: i32) -> (i32, i32) {
    %c0_i32 = arith.constant 0 : i32
    %c0_i32_0 = arith.constant 0 : i32
    %c0_i32_1 = arith.constant 0 : i32
    return %c0_i32, %c0_i32_0 : i32, i32
  }
  func.func @transform_5(%arg0: i32) -> (i32, i32, i32) {
    %c0_i32 = arith.constant 0 : i32
    %c0_i32_0 = arith.constant 0 : i32
    %c0_i32_1 = arith.constant 0 : i32
    %c0_i32_2 = arith.constant 0 : i32
    return %c0_i32, %c0_i32_0, %c0_i32_1 : i32, i32, i32
  }
  func.func @transform_6(%arg0: i32) -> (i32, i32) {
    %c0_i32 = arith.constant 0 : i32
    %c0_i32_0 = arith.constant 0 : i32
    %c0_i32_1 = arith.constant 0 : i32
    return %c0_i32, %c0_i32_0 : i32, i32
  }
  func.func @transform_7(%arg0: i32) -> (i32, i32) {
    %c0_i32 = arith.constant 0 : i32
    %c0_i32_0 = arith.constant 0 : i32
    %c0_i32_1 = arith.constant 0 : i32
    return %c0_i32, %c0_i32_0 : i32, i32
  }
  func.func @transform_8(%arg0: i32) -> (i32, i32, i32) {
    %c0_i32 = arith.constant 0 : i32
    %c0_i32_0 = arith.constant 0 : i32
    %c0_i32_1 = arith.constant 0 : i32
    return %arg0, %c0_i32, %c0_i32_0 : i32, i32, i32
  }
}

</mosaic_0001>

<bundles_post_ra>
// kernel: tpu_custom_call.1
= control target key start
LH: loop header
LB: loop body
LE: loop exit
PB: predicated region body
PF: predicated region fallthrough
CT: control target
= control target key end

     0   :  { %13 = vsyncpa [#allocation4], 0  ;;  %s5042_s0 = inlined_call_operand.vmem [shape: f32[2,256,16], index: 0, kind: input, shape index: {}]   ;;  %s5043_s1 = inlined_call_operand.vmem [shape: f32[1,16], index: 1, kind: input, shape index: {}]   ;;  %s5044_s2 = inlined_call_operand.vmem [shape: f32[1,16], index: 2, kind: input, shape index: {}]   ;;  %s5045_s3 = inlined_call_operand.vmem [shape: f32[16,8], index: 3, kind: input, shape index: {}]   ;;  %s5046_s4 = inlined_call_operand.vmem [shape: f32[8,16], index: 4, kind: input, shape index: {}]   ;;  %s5047_s5 = inlined_call_operand.vmem [shape: bf16[3,48,128], index: 5, kind: input, shape index: {}]   ;;  %s5048_s6 = inlined_call_operand.vmem [shape: f32[1,128], index: 6, kind: input, shape index: {}]   ;;  %s5049_s7 = inlined_call_operand.vmem [shape: f32[256,2], index: 7, kind: input, shape index: {}]   ;;  %s5050_s8 = inlined_call_operand.hbm [shape: f32[2,256,128], index: 8, kind: output, shape index: {}]  }
   0x1   :  { %15 = vsyncpa [#allocation4 + $0x1], 0  ;;  %s3226_s27 = smov 0   ;;  %s3228_s28 = smov 0  }
   0x2   :  { %s3230_s29 = smov 0   ;;  %s3232_s30 = smov 0  }
   0x3 LB: > { %s3247_s9 = sadd.s32 4294967295, %s3169_s30   ;;  %s2563_s10 = sadd.s32 4294967294, %s3169_s30   ;;  %s3169_s30 = sphi %s3232_s30, %s5333_s30   ;;  %s3165_s29 = sphi %s3230_s29, %s5332_s29   ;;  %s3161_s28 = sphi %s3228_s28, %s5331_s28   ;;  %s3157_s27 = sphi %s3226_s27, %s5330_s27  }
   0x4   : > { %s3251_s11 = sadd.s32 1, %s3169_s30   ;;  %s201_s12 = sadd.s32 1, %s3165_s29 }
   0x5   : > { %s198_s13 = ssub.s32 %s3169_s30, %s3251_s11  ;;  %p211_p0 = scmp.ne.s32.totalorder %s3165_s29, %s3161_s28 }
   0x6   : > { %p199_p1 = scmp.eq.s32.totalorder %s198_s13, 0  ;;  %p212_p2 = scmp.eq.s32.totalorder %s3247_s9, 1 }
   0x7   : > { %p217_p3 = scmp.ne.s32.totalorder %s3161_s28, %s3157_s27  ;;  %p218_p4 = scmp.eq.s32.totalorder %s2563_s10, 1 }
   0x8   : > { %s3262_s14 = scalar_select %p199_p1, %s3165_s29, %s201_s12  }
   0x9   : > { %p3264_p5 = por %p212_p2, %p211_p0  ;;  %p3268_p6 = por %p218_p4, %p217_p3 }
   0xa   : > { %p2566_p7 = scmp.ge.s32.totalorder %s3169_s30, 1  ;;  %p265_p8 = scmp.lt.s32.totalorder %s3169_s30, 3 }
   0xc   : > { %p266_p9 = pnand %p2566_p7, %p265_p8 }
   0xe   : > { %269 = sbr.rel (%p266_p9) target bundleno = 1178 (0x49a), region = 52 }
  0x15   : > { %v510_v0 = vld [vmem:[%s5045_s3] sm:$0xff]  ;;  %v511_v1 = vld [vmem:[%s5045_s3 + $0x8] sm:$0xff]  ;;  %p299_p10 = scmp.lt.s32.totalorder %s3247_s9, 1  ;;  %v3171_v2 = vmov 0.0|0.0   ;;  %vm3172_vm0 = vmmov 0   ;;  %v3173_v4 = vmov 0.0  }
  0x16   : > { %2838 = vmatprep.subr.bf16.mxu0 %v3171_v2  ;;  %v2839_v3 = vpack.c.bf16 %v511_v1, %v510_v0  ;;  %2716 = vmatprep.mubr.msk.f32.mxu0 %vm3172_vm0, %v3173_v4  ;;  %vm337_vm1 = vcmask 130048   ;;  %vm508_vm2 = vcmask 1040384   ;;  %vm596_vm3 = vcmask 64512   ;;  %s3176_s18 = smov 16   ;;  %s3177_s23 = smov 32  }
  0x17   : > { %s300_s21 = scalar_select %p299_p10, %s3247_s9, 1  ;;  %vm1466_vm6 = vcmask 392192   ;;  %vm1581_vm7 = vcmask 261248   ;;  %vm1678_vm8 = vcmask 392448  }
  0x18   : > { %2840 = vmatpush3.bf16.msra.mxu0 %v2839_v3  ;;  %s296_s13 = sand.u32 1, %s3161_s28   ;;  %s3178_s10 = smov [#allocation3]  }
  0x19   : > { %s2648_s22 = sshll.u32 %s300_s21, 8  ;;  %2719 = vmatprep.subr.mxu0 %v3173_v4  ;;  %s2567_s17 = sshll.u32 %s296_s13, 8 }
  0x1a   : > { %s3288_s25 = scalar_lea.vmem %s5042_s0, %s2648_s22  ;;  %s4896_s21 = scalar_lea.vmem [#allocation3], %s2567_s17 }
  0x1b   : > { %v3291_v5 = vld [vmem:[%s3288_s25] sm:$0xff]  ;;  %v3294_v6 = vld [vmem:[%s3288_s25 + $0x8] sm:$0xff]  ;;  %v3297_v7 = vld [vmem:[%s3288_s25 + $0x10] sm:$0xff]  ;;  %s2649_s22 = sshll.u32 %s3247_s9, 12  ;;  %s2501_s24 = sshll.u32 %s4896_s21, 4  ;;  %s4991_s24 = int_to_ptr.vmem [resolvable:$true] %s2501_s24 }
  0x1c   : > { %v338_v8 = vsel %vm337_vm1, %v3291_v5, 0.0  ;;  %v339_v9 = vsel %vm337_vm1, %v3294_v6, 0.0  ;;  %v341_v10 = vsel %vm337_vm1, %v3297_v7, 0.0  ;;  %v3306_v11 = vld [vmem:[%s3288_s25 + $0x18] sm:$0xff]  ;;  %v3311_v14 = vld [vmem:[%s3288_s25 + $0x20] sm:$0xff]  ;;  %v3316_v17 = vld [vmem:[%s3288_s25 + $0x28] sm:$0xff]  ;;  %v407_v32 = vmul.f32 %v3291_v5, %v3291_v5  ;;  %s4989_s26 = scalar_lea.hbm %s5050_s8, %s2649_s22 }
  0x1d   : > { %v340_v12 = vadd.f32 %v339_v9, %v338_v8  ;;  %v343_v13 = vsel %vm337_vm1, %v3306_v11, 0.0  ;;  %v345_v16 = vsel %vm337_vm1, %v3311_v14, 0.0  ;;  %v347_v19 = vsel %vm337_vm1, %v3316_v17, 0.0  ;;  %v3321_v20 = vld [vmem:[%s3288_s25 + $0x30] sm:$0xff]  ;;  %v3326_v23 = vld [vmem:[%s3288_s25 + $0x38] sm:$0xff]  ;;  %v3329_v25 = vld [vmem:[%s3288_s25 + $0x40] sm:$0xff] }
  0x1e   : > { %v349_v22 = vsel %vm337_vm1, %v3321_v20, 0.0  ;;  %v351_v26 = vsel %vm337_vm1, %v3326_v23, 0.0  ;;  %v353_v28 = vsel %vm337_vm1, %v3329_v25, 0.0  ;;  %v3336_v29 = vld [vmem:[%s3288_s25 + $0x48] sm:$0xff]  ;;  %v408_v33 = vmul.f32 %v3294_v6, %v3294_v6  ;;  %v3347_v35 = vld [vmem:[%s3288_s25 + $0x50] sm:$0xff]  ;;  %v3350_v37 = vld [vmem:[%s3288_s25 + $0x58] sm:$0xff] }
  0x1f   : > { %v342_v15 = vadd.f32 %v341_v10, %v340_v12  ;;  %v355_v31 = vsel %vm337_vm1, %v3336_v29, 0.0  ;;  %v409_v34 = vmul.f32 %v3297_v7, %v3297_v7  ;;  %v357_v38 = vsel %vm337_vm1, %v3347_v35, 0.0  ;;  %v3364_v46 = vld [vmem:[%s3288_s25 + $0x60] sm:$0xff]  ;;  %v3372_v52 = vld [vmem:[%s3288_s25 + $0x68] sm:$0xff]  ;;  %v3380_v58 = vld [vmem:[%s3288_s25 + $0x70] sm:$0xff]  ;;  %s3111_s12 = sshll.u32 %s3178_s10, 4  ;;  %s3112_s12 = int_to_ptr.vmem [resolvable:$false] %s3111_s12 }
  0x20   : > { %v410_v39 = vmul.f32 %v3306_v11, %v3306_v11  ;;  %v359_v41 = vsel %vm337_vm1, %v3350_v37, 0.0  ;;  %v411_v42 = vmul.f32 %v3311_v14, %v3311_v14  ;;  %v439_v43 = vsel %vm337_vm1, %v407_v32, 0.0  ;;  %v3388_v0 = vld [vmem:[%s3288_s25 + $0x78] sm:$0xff]  ;;  %v3396_v10 = vld [vmem:[%s3288_s25 + $0x80] sm:$0xff]  ;;  %s3113_s17 = scalar_lea.vmem %s3112_s12, 8192  ;;  %p3114_p0 = scmp.lt.s32.totalorder %s4991_s24, %s3112_s12 }
  0x21   : > { %v344_v18 = vadd.f32 %v343_v13, %v342_v15  ;;  %v440_v44 = vsel %vm337_vm1, %v408_v33, 0.0  ;;  %v442_v45 = vsel %vm337_vm1, %v409_v34, 0.0  ;;  %v361_v49 = vsel %vm337_vm1, %v3364_v46, 0.0 }
  0x22   : > { %v441_v48 = vadd.f32 %v440_v44, %v439_v43  ;;  %v412_v50 = vmul.f32 %v3316_v17, %v3316_v17  ;;  %v444_v51 = vsel %vm337_vm1, %v410_v39, 0.0  ;;  %v363_v55 = vsel %vm337_vm1, %v3372_v52, 0.0  ;;  %v3428_v43 = vld [vmem:[%s3288_s25 + $0xa0] sm:$0xff] }
  0x23   : > { %v346_v21 = vadd.f32 %v345_v16, %v344_v18  ;;  %v413_v56 = vmul.f32 %v3321_v20, %v3321_v20  ;;  %v446_v57 = vsel %vm337_vm1, %v411_v42, 0.0  ;;  %v365_v61 = vsel %vm337_vm1, %v3380_v58, 0.0 }
  0x24   : > { %v443_v54 = vadd.f32 %v442_v45, %v441_v48  ;;  %v414_v62 = vmul.f32 %v3326_v23, %v3326_v23  ;;  %v448_v63 = vsel %vm337_vm1, %v412_v50, 0.0  ;;  %v367_v3 = vsel %vm337_vm1, %v3388_v0, 0.0  ;;  %v3436_v50 = vld [vmem:[%s3288_s25 + $0xa8] sm:$0xff] }
  0x25   : > { %v348_v24 = vadd.f32 %v347_v19, %v346_v21  ;;  %v415_v8 = vmul.f32 %v3329_v25, %v3329_v25  ;;  %v450_v9 = vsel %vm337_vm1, %v413_v56, 0.0  ;;  %v369_v15 = vsel %vm337_vm1, %v3396_v10, 0.0  ;;  %v3404_v19 = vld [vmem:[%s3288_s25 + $0x88] sm:$0xff] }
  0x26   : > { %v445_v60 = vadd.f32 %v444_v51, %v443_v54  ;;  %v416_v16 = vmul.f32 %v3336_v29, %v3336_v29  ;;  %v452_v18 = vsel %vm337_vm1, %v414_v62, 0.0  ;;  %v418_v33 = vmul.f32 %v3350_v37, %v3350_v37 }
  0x27   : > { %v350_v27 = vadd.f32 %v349_v22, %v348_v24  ;;  %v371_v24 = vsel %vm337_vm1, %v3404_v19, 0.0  ;;  %v420_v48 = vmul.f32 %v3372_v52, %v3372_v52  ;;  %v379_v54 = vsel %vm337_vm1, %v3436_v50, 0.0 }
  0x28   : > { %v447_v2 = vadd.f32 %v446_v57, %v445_v60  ;;  %v456_v34 = vsel %vm337_vm1, %v416_v16, 0.0  ;;  %v3444_v57 = vld [vmem:[%s3288_s25 + $0xb0] sm:$0xff]  ;;  %v422_v62 = vmul.f32 %v3388_v0, %v3388_v0 }
  0x29   : > { %v352_v30 = vadd.f32 %v351_v26, %v350_v27  ;;  %v417_v26 = vmul.f32 %v3347_v35, %v3347_v35  ;;  %v454_v27 = vsel %vm337_vm1, %v415_v8, 0.0 }
  0x2a   : > { %v449_v13 = vadd.f32 %v448_v63, %v447_v2  ;;  %v464_v63 = vsel %vm337_vm1, %v420_v48, 0.0  ;;  %v427_v48 = vmul.f32 %v3428_v43, %v3428_v43 }
  0x2b   : > { %v354_v36 = vadd.f32 %v353_v28, %v352_v30  ;;  %v3412_v28 = vld [vmem:[%s3288_s25 + $0x90] sm:$0xff]  ;;  %v458_v42 = vsel %vm337_vm1, %v417_v26, 0.0 }
  0x2c   : > { %v451_v22 = vadd.f32 %v450_v9, %v449_v13  ;;  %v373_v32 = vsel %vm337_vm1, %v3412_v28, 0.0  ;;  %v423_v9 = vmul.f32 %v3396_v10, %v3396_v10  ;;  %v3460_v13 = vld [vmem:[%s3288_s25 + $0xc0] sm:$0xff] }
  0x2d   : > { %v356_v40 = vadd.f32 %v355_v31, %v354_v36  ;;  %v3420_v36 = vld [vmem:[%s3288_s25 + $0x98] sm:$0xff] }
  0x2e   : > { %v453_v31 = vadd.f32 %v452_v18, %v451_v22  ;;  %v385_v18 = vsel %vm337_vm1, %v3460_v13, 0.0  ;;  %v468_v22 = vsel %vm337_vm1, %v422_v62, 0.0 }
  0x2f   : > { %v358_v47 = vadd.f32 %v357_v38, %v356_v40  ;;  %v375_v40 = vsel %vm337_vm1, %v3420_v36, 0.0 }
  0x30   : > { %v455_v39 = vadd.f32 %v454_v27, %v453_v31  ;;  %v425_v31 = vmul.f32 %v3412_v28, %v3412_v28 }
  0x31   : > { %v360_v53 = vadd.f32 %v359_v41, %v358_v47  ;;  %v419_v41 = vmul.f32 %v3364_v46, %v3364_v46  ;;  %v377_v47 = vsel %vm337_vm1, %v3428_v43, 0.0 }
  0x32   : > { %v457_v45 = vadd.f32 %v456_v34, %v455_v39 }
  0x33   : > { %v362_v59 = vadd.f32 %v361_v49, %v360_v53  ;;  %v460_v49 = vsel %vm337_vm1, %v418_v33, 0.0  ;;  %v462_v56 = vsel %vm337_vm1, %v419_v41, 0.0  ;;  %v3476_v33 = vld [vmem:[%s3288_s25 + $0xd0] sm:$0xff] }
  0x34   : > { %v459_v53 = vadd.f32 %v458_v42, %v457_v45  ;;  %v389_v39 = vsel %vm337_vm1, %v3476_v33, 0.0  ;;  %v3484_v42 = vld [vmem:[%s3288_s25 + $0xd8] sm:$0xff] }
  0x35   : > { %v364_v1 = vadd.f32 %v363_v55, %v362_v59  ;;  %v421_v55 = vmul.f32 %v3380_v58, %v3380_v58 }
  0x36   : > { %v461_v60 = vadd.f32 %v460_v49, %v459_v53  ;;  %v474_v49 = vsel %vm337_vm1, %v425_v31, 0.0 }
  0x37   : > { %v366_v12 = vadd.f32 %v365_v61, %v364_v1  ;;  %v381_v61 = vsel %vm337_vm1, %v3444_v57, 0.0  ;;  %v3452_v1 = vld [vmem:[%s3288_s25 + $0xb8] sm:$0xff] }
  0x38   : > { %v383_v8 = vsel %vm337_vm1, %v3452_v1, 0.0 }
  0x39   : > { %v368_v21 = vadd.f32 %v367_v3, %v366_v12  ;;  %v463_v3 = vadd.f32 %v462_v56, %v461_v60  ;;  %v466_v12 = vsel %vm337_vm1, %v421_v55, 0.0  ;;  %v428_v56 = vmul.f32 %v3436_v50, %v3436_v50  ;;  %v3500_v60 = vld [vmem:[%s3288_s25 + $0xe8] sm:$0xff] }
  0x3b   : > { %v370_v30 = vadd.f32 %v369_v15, %v368_v21  ;;  %v465_v16 = vadd.f32 %v464_v63, %v463_v3  ;;  %v424_v21 = vmul.f32 %v3404_v19, %v3404_v19  ;;  %v395_v63 = vsel %vm337_vm1, %v3500_v60, 0.0 }
  0x3c   : > { %v478_v3 = vsel %vm337_vm1, %v427_v48, 0.0 }
  0x3d   : > { %v372_v38 = vadd.f32 %v371_v24, %v370_v30  ;;  %v3468_v24 = vld [vmem:[%s3288_s25 + $0xc8] sm:$0xff]  ;;  %v467_v27 = vadd.f32 %v466_v12, %v465_v16  ;;  %v472_v41 = vsel %vm337_vm1, %v424_v21, 0.0  ;;  %v430_v12 = vmul.f32 %v3452_v1, %v3452_v1  ;;  %v3511_v16 = vld [vmem:[%s3288_s25 + $0xf0] sm:$0xff] }
  0x3e   : > { %v387_v30 = vsel %vm337_vm1, %v3468_v24, 0.0  ;;  %v432_v31 = vmul.f32 %v3468_v24, %v3468_v24 }
  0x3f   : > { %v374_v44 = vadd.f32 %v373_v32, %v372_v38  ;;  %v470_v32 = vsel %vm337_vm1, %v423_v9, 0.0  ;;  %v469_v38 = vadd.f32 %v468_v22, %v467_v27  ;;  %v397_v22 = vsel %vm337_vm1, %v3511_v16, 0.0 }
  0x40   : > { %v488_v48 = vsel %vm337_vm1, %v432_v31, 0.0 }
  0x41   : > { %v376_v51 = vadd.f32 %v375_v40, %v374_v44  ;;  %v426_v40 = vmul.f32 %v3420_v36, %v3420_v36  ;;  %v471_v45 = vadd.f32 %v470_v32, %v469_v38  ;;  %v484_v32 = vsel %vm337_vm1, %v430_v12, 0.0 }
  0x43   : > { %v378_v59 = vadd.f32 %v377_v47, %v376_v51  ;;  %v391_v47 = vsel %vm337_vm1, %v3484_v42, 0.0  ;;  %v3492_v51 = vld [vmem:[%s3288_s25 + $0xe0] sm:$0xff] }
  0x44   : > { %v393_v55 = vsel %vm337_vm1, %v3492_v51, 0.0 }
  0x45   : > { %v380_v2 = vadd.f32 %v379_v54, %v378_v59  ;;  %v473_v54 = vadd.f32 %v472_v41, %v471_v45  ;;  %v476_v59 = vsel %vm337_vm1, %v426_v40, 0.0  ;;  %v433_v41 = vmul.f32 %v3476_v33, %v3476_v33 }
  0x47   : > { %v382_v15 = vadd.f32 %v381_v61, %v380_v2  ;;  %v475_v62 = vadd.f32 %v474_v49, %v473_v54  ;;  %v429_v2 = vmul.f32 %v3444_v57, %v3444_v57  ;;  %v435_v54 = vmul.f32 %v3492_v51, %v3492_v51 }
  0x49   : > { %v384_v26 = vadd.f32 %v383_v8, %v382_v15  ;;  %v477_v9 = vadd.f32 %v476_v59, %v475_v62  ;;  %v480_v15 = vsel %vm337_vm1, %v428_v56, 0.0  ;;  %v482_v27 = vsel %vm337_vm1, %v429_v2, 0.0 }
  0x4a   : > { %v436_v59 = vmul.f32 %v3500_v60, %v3500_v60  ;;  %v437_v2 = vmul.f32 %v3511_v16, %v3511_v16 }
  0x4b   : > { %v386_v34 = vadd.f32 %v385_v18, %v384_v26  ;;  %v479_v21 = vadd.f32 %v478_v3, %v477_v9  ;;  %v431_v26 = vmul.f32 %v3460_v13, %v3460_v13  ;;  %v494_v3 = vsel %vm337_vm1, %v435_v54, 0.0  ;;  %v3556_v54 = vld [vmem:[%s5049_s7 + $0x60] sm:$0xff] }
  0x4c   : > { %v496_v12 = vsel %vm337_vm1, %v436_v59, 0.0  ;;  %v1028_v59 = vld [vmem:[%s5049_s7 + $0x58] sm:$0xff] }
  0x4d   : > { %v388_v44 = vadd.f32 %v387_v30, %v386_v34  ;;  %v481_v30 = vadd.f32 %v480_v15, %v479_v21  ;;  %v3522_v34 = vld [vmem:[%s3288_s25 + $0xf8] sm:$0xff]  ;;  %v498_v21 = vsel %vm337_vm1, %v437_v2, 0.0  ;;  %v1033_v2 = vld [vmem:[%s5049_s7 + $0x80] sm:$0xff] }
  0x4e   : > { %v399_v40 = vsel %vm337_vm1, %v3522_v34, 0.0  ;;  %v438_v9 = vmul.f32 %v3522_v34, %v3522_v34 }
  0x4f   : > { %v390_v53 = vadd.f32 %v389_v39, %v388_v44  ;;  %v483_v39 = vadd.f32 %v482_v27, %v481_v30  ;;  %v486_v44 = vsel %vm337_vm1, %v431_v26, 0.0 }
  0x50   : > { %v500_v26 = vsel %vm337_vm1, %v438_v9, 0.0  ;;  %v1036_v9 = vld [vmem:[%s5049_s7 + $0x98] sm:$0xff] }
  0x51   : > { %v392_v61 = vadd.f32 %v391_v47, %v390_v53  ;;  %v485_v45 = vadd.f32 %v484_v32, %v483_v39  ;;  %v434_v47 = vmul.f32 %v3484_v42, %v3484_v42 }
  0x53   : > { %v394_v8 = vadd.f32 %v393_v55, %v392_v61  ;;  %v487_v53 = vadd.f32 %v486_v44, %v485_v45  ;;  %v490_v55 = vsel %vm337_vm1, %v433_v41, 0.0  ;;  %v492_v61 = vsel %vm337_vm1, %v434_v47, 0.0 }
  0x55   : > { %v396_v18 = vadd.f32 %v395_v63, %v394_v8  ;;  %v489_v56 = vadd.f32 %v488_v48, %v487_v53  ;;  %v595_v53 = vld [vmem:[%s5046_s4] sm:$0xff] }
  0x57   : > { %v398_v38 = vadd.f32 %v397_v22, %v396_v18  ;;  %v491_v63 = vadd.f32 %v490_v55, %v489_v56  ;;  %v3561_v55 = vld [vmem:[%s5049_s7 + $0x50] sm:$0xff]  ;;  %v5051_v56 = vmov 1  }
  0x58   : > { %2960 = vset.pattern.permute.xlu1 %v5051_v56  ;;  %2959 = vset.pattern.permute.xlu0 %v5051_v56  ;;  %v5053_v56 = vmov 0  }
  0x59   : > { %v400_v49 = vadd.f32 %v399_v40, %v398_v38  ;;  %v493_v8 = vadd.f32 %v492_v61, %v491_v63  ;;  %1355 = vperm.xlu1 %2960, %v3556_v54   ;;  %1347 = vperm.xlu0 %2959, %v3561_v55   ;;  %v1032_v61 = vld [vmem:[%s5049_s7 + $0x78] sm:$0xff]  ;;  %v1034_v63 = vld [vmem:[%s5049_s7 + $0x88] sm:$0xff] }
  0x5b   : > { %v401_v62 = vrot.slane %v400_v49, 4  ;;  %v495_v18 = vadd.f32 %v494_v3, %v493_v8  ;;  %v1018_v3 = vld [vmem:[%s5049_s7 + $0x8] sm:$0xff]  ;;  %v1017_v8 = vld [vmem:[%s5049_s7] sm:$0xff] }
  0x5d   : > { %v402_v15 = vadd.f32 %v401_v62, %v400_v49  ;;  %v497_v22 = vadd.f32 %v496_v12, %v495_v18  ;;  %1351 = vperm.xlu0 %2959, %v1028_v59   ;;  %v1031_v62 = vld [vmem:[%s5049_s7 + $0x70] sm:$0xff] }
  0x5e   : > { %v1035_v12 = vld [vmem:[%s5049_s7 + $0x90] sm:$0xff] }
  0x5f   : > { %v403_v27 = vrot.slane %v402_v15, 2  ;;  %v499_v30 = vadd.f32 %v498_v21, %v497_v22  ;;  %v1019_v18 = vld [vmem:[%s5049_s7 + $0x10] sm:$0xff]  ;;  %v1038_v21 = vld [vmem:[%s5049_s7 + $0xa8] sm:$0xff]  ;;  %v1037_v22 = vld [vmem:[%s5049_s7 + $0xa0] sm:$0xff] }
  0x61   : > { %v501_v31 = vadd.f32 %v500_v26, %v499_v30  ;;  %v404_v32 = vadd.f32 %v403_v27, %v402_v15  ;;  %1363 = vperm.xlu0 %2959, %v1031_v62   ;;  %v1020_v15 = vld [vmem:[%s5049_s7 + $0x18] sm:$0xff]  ;;  %v1022_v26 = vld [vmem:[%s5049_s7 + $0x28] sm:$0xff]  ;;  %v1021_v27 = vld [vmem:[%s5049_s7 + $0x20] sm:$0xff] }
  0x62   : > { %v1040_v30 = vld [vmem:[%s5049_s7 + $0xb8] sm:$0xff] }
  0x63   : > { %v502_v38 = vrot.slane %v501_v31, 4  ;;  %v405_v40 = vrot.slane %v404_v32, 1 }
  0x65   : > { %v503_v39 = vadd.f32 %v502_v38, %v501_v31  ;;  %v406_v45 = vadd.f32 %v405_v40, %v404_v32  ;;  %1371 = vperm.xlu0 %2959, %v1033_v2   ;;  %v1039_v31 = vld [vmem:[%s5049_s7 + $0xb0] sm:$0xff]  ;;  %v1024_v32 = vld [vmem:[%s5049_s7 + $0x38] sm:$0xff]  ;;  %v1041_v40 = vld [vmem:[%s5049_s7 + $0xc0] sm:$0xff] }
  0x66   : > { %v1023_v38 = vld [vmem:[%s5049_s7 + $0x30] sm:$0xff] }
  0x67   : > { %v504_v41 = vrot.slane %v503_v39, 2 }
  0x69   : > { %v505_v44 = vadd.f32 %v504_v41, %v503_v39  ;;  %1307 = vperm.xlu0 %2959, %v1017_v8   ;;  %v1042_v39 = vld [vmem:[%s5049_s7 + $0xc8] sm:$0xff] }
  0x6a   : > { %v1026_v41 = vld [vmem:[%s5049_s7 + $0x48] sm:$0xff] }
  0x6b   : > { %v506_v47 = vrot.slane %v505_v44, 1 }
  0x6d   : > { %v507_v48 = vadd.f32 %v506_v47, %v505_v44  ;;  %1379 = vperm.xlu0 %2959, %v1035_v12   ;;  %v1025_v44 = vld [vmem:[%s5049_s7 + $0x40] sm:$0xff]  ;;  %v1043_v47 = vld [vmem:[%s5049_s7 + $0xd0] sm:$0xff] }
  0x6f   : > { %v509_v49 = vsel %vm508_vm2, %v406_v45, %v507_v48  ;;  %v1044_v45 = vld [vmem:[%s5049_s7 + $0xd8] sm:$0xff]  ;;  %v1046_v48 = vld [vmem:[%s5049_s7 + $0xe8] sm:$0xff] }
  0x70   : > { %2717 = vmatmul.mubr.msk.f32.vlgmr.msra.gmra.mrb[0].mxu0 %vm337_vm1, %v509_v49  ;;  %v1045_v49 = vld [vmem:[%s5049_s7 + $0xe0] sm:$0xff] }
  0x71   : > { %2721 = vmatprep.mubr.msk.f32.mxu0 %vm3172_vm0, %v3173_v4  ;;  %2720 = vmatpush3.msra.mxu0 %v595_v53  ;;  %v3570_v4 = vld [vmem:[%s5049_s7 + $0x68] sm:$0xff]  ;;  %v1048_v53 = vld [vmem:[%s5049_s7 + $0xf8] sm:$0xff] }
  0x72   : > { %1359 = vperm.xlu1 %2960, %v3570_v4   ;;  %1315 = vperm.xlu0 %2959, %v1019_v18  }
  0x76   : > { %1367 = vperm.xlu1 %2960, %v1032_v61   ;;  %1387 = vperm.xlu0 %2959, %v1037_v22  }
  0x7a   : > { %1375 = vperm.xlu1 %2960, %v1034_v63   ;;  %1323 = vperm.xlu0 %2959, %v1021_v27  }
  0x7e   : > { %1311 = vperm.xlu1 %2960, %v1018_v3   ;;  %1395 = vperm.xlu0 %2959, %v1039_v31  }
  0x82   : > { %1383 = vperm.xlu1 %2960, %v1036_v9   ;;  %1331 = vperm.xlu0 %2959, %v1023_v38  }
  0x86   : > { %1319 = vperm.xlu1 %2960, %v1020_v15   ;;  %1403 = vperm.xlu0 %2959, %v1041_v40  }
  0x8a   : > { %1391 = vperm.xlu1 %2960, %v1038_v21   ;;  %1339 = vperm.xlu0 %2959, %v1025_v44  }
  0x8e   : > { %1327 = vperm.xlu1 %2960, %v1022_v26   ;;  %1411 = vperm.xlu0 %2959, %v1043_v47  }
  0x92   : > { %1399 = vperm.xlu1 %2960, %v1040_v30   ;;  %1419 = vperm.xlu0 %2959, %v1045_v49  }
  0x96   : > { %1335 = vperm.xlu1 %2960, %v1024_v32   ;;  %1431 = vperm.xlu0 %2959, %v1048_v53  }
  0x9a   : > { %1407 = vperm.xlu1 %2960, %v1042_v39   ;;  %2963 = vset.pattern.permute.xlu0 %v5053_v56 }
  0x9b   : > { %1101 = vperm.xlu0 %2963, %v3561_v55  }
  0x9e   : > { %1343 = vperm.xlu1 %2960, %v1026_v41  }
  0x9f   : > { %1116 = vperm.xlu0 %2963, %v3570_v4  }
  0xa2   : > { %1415 = vperm.xlu1 %2960, %v1044_v45  }
  0xa3   : > { %1126 = vperm.xlu0 %2963, %v1032_v61  }
  0xa6   : > { %1423 = vperm.xlu1 %2960, %v1046_v48  }
  0xa7   : > { %1136 = vperm.xlu0 %2963, %v1034_v63  }
  0xaa   : > { %2961 = vset.pattern.permute.xlu1 %v5053_v56 }
  0xab   : > { %1106 = vperm.xlu1 %2961, %v1028_v59   ;;  %1056 = vperm.xlu0 %2963, %v1018_v3   ;;  %v1047_v59 = vld [vmem:[%s5049_s7 + $0xf0] sm:$0xff] }
  0xaf   : > { %1111 = vperm.xlu1 %2961, %v3556_v54   ;;  %1146 = vperm.xlu0 %2963, %v1036_v9   ;;  %v5119_v54 = vmov 1  }
  0xb3   : > { %1121 = vperm.xlu1 %2961, %v1031_v62   ;;  %1066 = vperm.xlu0 %2963, %v1020_v15  }
  0xb7   : > { %1131 = vperm.xlu1 %2961, %v1033_v2   ;;  %1156 = vperm.xlu0 %2963, %v1038_v21  }
  0xbb   : > { %1051 = vperm.xlu1 %2961, %v1017_v8   ;;  %1071 = vperm.xlu0 %2963, %v1021_v27  }
  0xbf   : > { %1141 = vperm.xlu1 %2961, %v1035_v12   ;;  %1166 = vperm.xlu0 %2963, %v1040_v30  }
  0xc3   : > { %1061 = vperm.xlu1 %2961, %v1019_v18   ;;  %1086 = vperm.xlu0 %2963, %v1024_v32  }
  0xc7   : > { %1151 = vperm.xlu1 %2961, %v1037_v22   ;;  %1176 = vperm.xlu0 %2963, %v1042_v39  }
  0xcb   : > { %2962 = vset.pattern.permute.xlu1 %v5119_v54  ;;  %1096 = vperm.xlu0 %2963, %v1026_v41  }
  0xcc   : > { %1427 = vperm.xlu1 %2962, %v1047_v59  }
  0xcf   : > { %1186 = vperm.xlu0 %2963, %v1044_v45  }
  0xd0   : > { %2964 = vset.pattern.permute.xlu1 %v5053_v56 }
  0xd1   : > { %1076 = vperm.xlu1 %2964, %v1022_v26  }
  0xd3   : > { %1196 = vperm.xlu0 %2963, %v1046_v48   ;;  %v684_v48 = vlaneseq }
  0xd5   : > { %1161 = vperm.xlu1 %2964, %v1039_v31   ;;  %v3706_v59 = vshrl.u32 %v684_v48, 7 }
  0xd7   : > { %v723_v56 = vsub.s32 0, %v3706_v59  ;;  %vm1273_vm4 = vcmp.lt.s32.totalorder %v3706_v59, 7  ;;  %vm984_vm5 = vcmp.lt.s32.totalorder %v3706_v59, 1 }
  0xd8   : > { %v3668_v12 = vpop.permute.xlu0 %1347  ;;  %v3670_v15 = vpop.permute.xlu1 %1355 }
  0xd9   : > { %1081 = vperm.xlu1 %2964, %v1023_v38   ;;  %5120 = vst [vmem:[#allocation6_spill] sm:$0xff] %v3668_v12  ;;  %5121 = vst [vmem:[#allocation7_spill] sm:$0xff] %v3670_v15 }
  0xdc   : > { %v3672_v18 = vpop.permute.xlu0 %1351 }
  0xdd   : > { %1171 = vperm.xlu1 %2964, %v1041_v40   ;;  %5122 = vst [vmem:[#allocation8_spill] sm:$0xff] %v3672_v18 }
  0xe0   : > { %v3676_v22 = vpop.permute.xlu0 %1363 }
  0xe1   : > { %1091 = vperm.xlu1 %2964, %v1025_v44   ;;  %5124 = vst [vmem:[#allocation10_spill] sm:$0xff] %v3676_v22 }
  0xe4   : > { %v3680_v27 = vpop.permute.xlu0 %1371 }
  0xe5   : > { %1181 = vperm.xlu1 %2964, %v1043_v47  }
  0xe8   : > { %v3684_v31 = vpop.permute.xlu0 %1307 }
  0xe9   : > { %1191 = vperm.xlu1 %2964, %v1045_v49  }
  0xec   : > { %v3688_v38 = vpop.permute.xlu0 %1379 }
  0xed   : > { %5127 = vst [vmem:[#allocation13_spill] sm:$0xff] %v3688_v38 }
  0xf1   : > { %v3674_v21 = vpop.permute.xlu1 %1359  ;;  %v3692_v40 = vpop.permute.xlu0 %1315 }
  0xf2   : > { %5123 = vst [vmem:[#allocation9_spill] sm:$0xff] %v3674_v21  ;;  %5129 = vst [vmem:[#allocation15_spill] sm:$0xff] %v3692_v40 }
  0xf5   : > { %v3678_v26 = vpop.permute.xlu1 %1367  ;;  %v3696_v44 = vpop.permute.xlu0 %1387 }
  0xf6   : > { %5125 = vst [vmem:[#allocation11_spill] sm:$0xff] %v3678_v26  ;;  %5131 = vst [vmem:[#allocation17_spill] sm:$0xff] %v3696_v44 }
  0xf9   : > { %v3682_v30 = vpop.permute.xlu1 %1375  ;;  %v3700_v47 = vpop.permute.xlu0 %1323 }
  0xfa   : > { %5133 = vst [vmem:[#allocation19_spill] sm:$0xff] %v3700_v47 }
  0xfd   : > { %v3686_v32 = vpop.permute.xlu1 %1311  ;;  %v3704_v53 = vpop.permute.xlu0 %1395 }
  0xfe   : > { %5126 = vst [vmem:[#allocation12_spill] sm:$0xff] %v3686_v32  ;;  %5135 = vst [vmem:[#allocation21_spill] sm:$0xff] %v3704_v53 }
 0x101   : > { %v3690_v39 = vpop.permute.xlu1 %1383 }
 0x102   : > { %5128 = vst [vmem:[#allocation14_spill] sm:$0xff] %v3690_v39 }
 0x105   : > { %v3694_v41 = vpop.permute.xlu1 %1319 }
 0x106   : > { %5130 = vst [vmem:[#allocation16_spill] sm:$0xff] %v3694_v41 }
 0x109   : > { %v3698_v45 = vpop.permute.xlu1 %1391 }
 0x10a   : > { %5132 = vst [vmem:[#allocation18_spill] sm:$0xff] %v3698_v45 }
 0x10d   : > { %v3702_v49 = vpop.permute.xlu1 %1327 }
 0x10e   : > { %5134 = vst [vmem:[#allocation20_spill] sm:$0xff] %v3702_v49 }
 0x143   : > { %v581_v55 = vpop.f32.mrb[0].mxu0 }
 0x144   : > { %v586_v4 = vmul.f32 0.001953125, %v581_v55  ;;  %v2718_v61 = vpop.f32.mrb[1].mxu0  ;;  %v2572_v55 = vld [vmem:[%s5043_s1] ss:$0 sm:$0xff] }
 0x146   : > { %v587_v62 = vmul.f32 %v586_v4, %v586_v4 }
 0x148   : > { %v589_v63 = vrot.slane %v587_v62, 7 }
 0x14a   : > { %v591_v2 = vsub.f32 %v586_v4, %v589_v63  ;;  %v3711_v63 = vpop.permute.xlu1 %1399 }
 0x14b   : > { %5136 = vst [vmem:[#allocation22_spill] sm:$0xff] %v3711_v63 }
 0x14c   : > { %v592_v3 = vadd.f32 1e-05, %v591_v2  ;;  %v686_v2 = vsub.s32 1, %v3706_v59 }
 0x14e   : > { %2975 = vrsqrt.f32 %v592_v3  ;;  %v3714_v3 = vpop.permute.xlu0 %1331  ;;  %v3722_v12 = vpop.permute.xlu1 %1335 }
 0x14f   : > { %5137 = vst [vmem:[#allocation23_spill] sm:$0xff] %v3714_v3  ;;  %5138 = vst [vmem:[#allocation24_spill] sm:$0xff] %v3722_v12 }
 0x158   : > { %v2976_v8 = vpop.eup %2975 }
 0x159   : > { %v594_v9 = vsel %vm508_vm2, %v586_v4, %v2976_v8 }
 0x15a   : > { %2722 = vmatmul.mubr.msk.f32.vlgmr.msra.gmra.mrb[2].mxu0 %vm596_vm3, %v594_v9  ;;  %v678_v9 = vld [vmem:[%s5044_s2] sm:$0x1] }
 0x22d   : > { %v666_v4 = vpop.f32.mrb[2].mxu0 }
 0x22e   : > { %v677_v61 = vmul.f32 %v2572_v55, %v666_v4  ;;  %v2723_v62 = vpop.f32.mrb[3].mxu0  ;;  %v3724_v55 = vpop.permute.xlu0 %1403 }
 0x22f   : > { %5139 = vst [vmem:[#allocation25_spill] sm:$0xff] %v3724_v55 }
 0x230   : > { %v680_v8 = vrot.slane %v677_v61, 1  ;;  %v3720_v54 = vrot.slane %v677_v61, %v686_v2 }
 0x232   : > { %v682_v48 = vmul.f32 %v680_v8, %v666_v4  ;;  %v688_v21 = vmul.f32 %v3720_v54, %v3291_v5  ;;  %v689_v15 = vmul.f32 %v3720_v54, %v3294_v6  ;;  %v690_v4 = vmul.f32 %v3720_v54, %v3297_v7 }
 0x233   : > { %v692_v61 = vmul.f32 %v3720_v54, %v3311_v14  ;;  %v693_v2 = vmul.f32 %v3720_v54, %v3316_v17  ;;  %v694_v8 = vmul.f32 %v3720_v54, %v3321_v20  ;;  %v696_v5 = vmul.f32 %v3720_v54, %v3329_v25 }
 0x234   : > { %v683_v18 = vsub.f32 %v678_v9, %v682_v48  ;;  %v703_v6 = vmul.f32 %v3720_v54, %v3388_v0  ;;  %v704_v7 = vmul.f32 %v3720_v54, %v3396_v10  ;;  %v705_v14 = vmul.f32 %v3720_v54, %v3404_v19  ;;  %v3766_v19 = vpop.permute.xlu0 %1339 }
 0x235   : > { %v719_v17 = vmul.f32 %v3720_v54, %v3522_v34  ;;  %v709_v25 = vmul.f32 %v3720_v54, %v3436_v50  ;;  %v710_v0 = vmul.f32 %v3720_v54, %v3444_v57  ;;  %5141 = vst [vmem:[#allocation27_spill] sm:$0xff] %v3766_v19  ;;  %v711_v50 = vmul.f32 %v3720_v54, %v3452_v1 }
 0x236   : > { %v3726_v62 = vrot.slane %v683_v18, %v723_v56  ;;  %v695_v56 = vmul.f32 %v3720_v54, %v3326_v23  ;;  %v3755_v18 = vpop.permute.xlu1 %1407  ;;  %v708_v23 = vmul.f32 %v3720_v54, %v3428_v43  ;;  %v712_v57 = vmul.f32 %v3720_v54, %v3460_v13 }
 0x237   : > { %5140 = vst [vmem:[#allocation26_spill] sm:$0xff] %v3755_v18  ;;  %v715_v1 = vmul.f32 %v3720_v54, %v3484_v42  ;;  %v716_v13 = vmul.f32 %v3720_v54, %v3492_v51  ;;  %v718_v42 = vmul.f32 %v3720_v54, %v3511_v16  ;;  %v701_v39 = vmul.f32 %v3720_v54, %v3372_v52 }
 0x238   : > { %v3753_v20 = vadd.f32 %v3726_v62, %v688_v21  ;;  %v3764_v10 = vadd.f32 %v3726_v62, %v692_v61  ;;  %v3769_v34 = vadd.f32 %v3726_v62, %v719_v17  ;;  %v3773_v9 = vadd.f32 %v3726_v62, %v693_v2 }
 0x239   : > { %v3776_v43 = vadd.f32 %v3726_v62, %v694_v8  ;;  %v3783_v48 = vadd.f32 %v3726_v62, %v695_v56  ;;  %v3786_v61 = vadd.f32 %v3726_v62, %v696_v5  ;;  %v713_v17 = vmul.f32 %v3720_v54, %v3468_v24 }
 0x23a   : > { %v758_v21 = vsub.f32 0.0, %v3753_v20  ;;  %v714_v2 = vmul.f32 %v3720_v54, %v3476_v33  ;;  %v789_v8 = vsub.f32 0.0, %v3769_v34  ;;  %v717_v56 = vmul.f32 %v3720_v54, %v3500_v60 }
 0x23b   : > { %v3800_v5 = vadd.f32 %v3726_v62, %v703_v6  ;;  %v3803_v55 = vadd.f32 %v3726_v62, %v704_v7  ;;  %v3806_v33 = vadd.f32 %v3726_v62, %v705_v14  ;;  %v3813_v51 = vadd.f32 %v3726_v62, %v708_v23 }
 0x23c   : > { %v790_v18 = vmul.f32 1.442695, %v758_v21  ;;  %v852_v24 = vmul.f32 1.442695, %v789_v8  ;;  %v3808_v21 = vpop.permute.xlu1 %1343  ;;  %v3816_v60 = vadd.f32 %v3726_v62, %v709_v25  ;;  %v3819_v6 = vadd.f32 %v3726_v62, %v710_v0 }
 0x23d   : > { %5142 = vst [vmem:[#allocation28_spill] sm:$0xff] %v3808_v21  ;;  %v3824_v7 = vadd.f32 %v3726_v62, %v711_v50  ;;  %v3827_v14 = vadd.f32 %v3726_v62, %v712_v57  ;;  %v3830_v16 = vadd.f32 %v3726_v62, %v713_v17  ;;  %v3833_v23 = vadd.f32 %v3726_v62, %v714_v2 }
 0x23e   : > { %2977 = vpow2.f32 %v790_v18  ;;  %5143 = vst [vmem:[#allocation29_spill] sm:$0xff] %v3816_v60  ;;  %5144 = vst [vmem:[#allocation30_spill] sm:$0xff] %v3819_v6  ;;  %v3821_v18 = vpop.permute.xlu0 %1411  ;;  %v3836_v25 = vadd.f32 %v3726_v62, %v715_v1  ;;  %v3839_v0 = vadd.f32 %v3726_v62, %v716_v13  ;;  %v3842_v8 = vadd.f32 %v3726_v62, %v717_v56 }
 0x23f   : > { %5145 = vst [vmem:[#allocation31_spill] sm:$0xff] %v3821_v18  ;;  %2979 = vpow2.f32 %v852_v24  ;;  %5146 = vst [vmem:[#allocation32_spill] sm:$0xff] %v3824_v7  ;;  %v3845_v50 = vadd.f32 %v3726_v62, %v718_v42  ;;  %v773_v57 = vsub.f32 0.0, %v3800_v5  ;;  %v774_v17 = vsub.f32 0.0, %v3803_v55 }
 0x240   : > { %5147 = vst [vmem:[#allocation33_spill] sm:$0xff] %v3827_v14  ;;  %5148 = vst [vmem:[#allocation34_spill] sm:$0xff] %v3830_v16  ;;  %v775_v24 = vsub.f32 0.0, %v3806_v33  ;;  %v691_v2 = vmul.f32 %v3720_v54, %v3306_v11  ;;  %v3853_v1 = vadd.f32 %v3726_v62, %v689_v15  ;;  %v3856_v13 = vadd.f32 %v3726_v62, %v690_v4  ;;  %v3858_v42 = vpop.permute.xlu1 %1415 }
 0x241   : > { %5149 = vst [vmem:[#allocation35_spill] sm:$0xff] %v3833_v23  ;;  %5150 = vst [vmem:[#allocation36_spill] sm:$0xff] %v3836_v25  ;;  %v820_v56 = vmul.f32 1.442695, %v773_v57  ;;  %v822_v18 = vmul.f32 1.442695, %v774_v17  ;;  %v706_v11 = vmul.f32 %v3720_v54, %v3412_v28 }
 0x242   : > { %5151 = vst [vmem:[#allocation37_spill] sm:$0xff] %v3839_v0  ;;  %5152 = vst [vmem:[#allocation38_spill] sm:$0xff] %v3842_v8  ;;  %v824_v63 = vmul.f32 1.442695, %v775_v24  ;;  %v3861_v53 = vadd.f32 %v3726_v62, %v691_v2  ;;  %v3863_v45 = vpop.permute.xlu0 %1419  ;;  %v759_v15 = vsub.f32 0.0, %v3853_v1  ;;  %v760_v4 = vsub.f32 0.0, %v3856_v13 }
 0x243   : > { %5153 = vst [vmem:[#allocation39_spill] sm:$0xff] %v3845_v50  ;;  %5154 = vst [vmem:[#allocation40_spill] sm:$0xff] %v3858_v42  ;;  %2981 = vpow2.f32 %v820_v56  ;;  %v762_v24 = vsub.f32 0.0, %v3764_v10  ;;  %v3876_v56 = vadd.f32 %v3726_v62, %v706_v11  ;;  %v763_v28 = vsub.f32 0.0, %v3773_v9 }
 0x244   : > { %5155 = vst [vmem:[#allocation41_spill] sm:$0xff] %v3863_v45  ;;  %2983 = vpow2.f32 %v822_v18  ;;  %v761_v17 = vsub.f32 0.0, %v3861_v53  ;;  %v697_v45 = vmul.f32 %v3720_v54, %v3336_v29  ;;  %v698_v18 = vmul.f32 %v3720_v54, %v3347_v35 }
 0x245   : > { %2985 = vpow2.f32 %v824_v63  ;;  %v3879_v63 = vpop.permute.xlu1 %1423  ;;  %v700_v42 = vmul.f32 %v3720_v54, %v3364_v46  ;;  %v702_v35 = vmul.f32 %v3720_v54, %v3380_v58  ;;  %v792_v11 = vmul.f32 1.442695, %v759_v15 }
 0x246   : > { %5156 = vst [vmem:[#allocation42_spill] sm:$0xff] %v3879_v63  ;;  %v3887_v22 = vpop.permute.xlu0 %1431  ;;  %v794_v21 = vmul.f32 1.442695, %v760_v4  ;;  %v707_v63 = vmul.f32 %v3720_v54, %v3420_v36  ;;  %v798_v19 = vmul.f32 1.442695, %v762_v24  ;;  %v3894_v46 = vadd.f32 %v3726_v62, %v697_v45 }
 0x247   : > { %5157 = vst [vmem:[#allocation43_spill] sm:$0xff] %v3887_v22  ;;  %v776_v52 = vsub.f32 0.0, %v3876_v56  ;;  %v3898_v22 = vadd.f32 %v3726_v62, %v698_v18  ;;  %v764_v15 = vsub.f32 0.0, %v3776_v43  ;;  %v3908_v45 = vadd.f32 %v3726_v62, %v701_v39 }
 0x248   : > { %v2978_v44 = vpop.eup %2977  ;;  %v765_v4 = vsub.f32 0.0, %v3783_v48  ;;  %v3914_v24 = vadd.f32 %v3726_v62, %v702_v35  ;;  %v767_v39 = vsub.f32 0.0, %v3894_v46  ;;  %v3922_v35 = vadd.f32 %v3726_v62, %v707_v63 }
 0x249   : > { %v854_v57 = vadd.f32 1.0, %v2978_v44  ;;  %v2980_v2 = vpop.eup %2979  ;;  %v699_v44 = vmul.f32 %v3720_v54, %v3350_v37  ;;  %v796_v37 = vmul.f32 1.442695, %v761_v17  ;;  %v3905_v54 = vadd.f32 %v3726_v62, %v700_v42  ;;  %v3911_v17 = vpop.permute.xlu1 %1106 }
 0x24a   : > { %v885_v29 = vadd.f32 1.0, %v2980_v2  ;;  %v800_v2 = vmul.f32 1.442695, %v763_v28  ;;  %5158 = vst [vmem:[#allocation44_spill] sm:$0xff] %v3911_v17  ;;  %v766_v28 = vsub.f32 0.0, %v3786_v61  ;;  %v780_v47 = vsub.f32 0.0, %v3819_v6 }
 0x24b   : > { %2987 = vrcp.f32 %v854_v57  ;;  %v3901_v58 = vadd.f32 %v3726_v62, %v699_v44  ;;  %v3917_v44 = vpop.permute.xlu0 %1101  ;;  %v802_v12 = vmul.f32 1.442695, %v764_v15  ;;  %v770_v3 = vsub.f32 0.0, %v3905_v54 }
 0x24c   : > { %2989 = vrcp.f32 %v885_v29  ;;  %5159 = vst [vmem:[#allocation45_spill] sm:$0xff] %v3917_v44  ;;  %v826_v29 = vmul.f32 1.442695, %v776_v52  ;;  %v771_v52 = vsub.f32 0.0, %v3908_v45  ;;  %v772_v62 = vsub.f32 0.0, %v3914_v24 }
 0x24d   : > { %2991 = vpow2.f32 %v792_v11  ;;  %v2982_v36 = vpop.eup %2981  ;;  %v3931_v15 = vpop.permute.xlu1 %1111  ;;  %v782_v40 = vsub.f32 0.0, %v3827_v14 }
 0x24e   : > { %2993 = vpow2.f32 %v794_v21  ;;  %v2984_v57 = vpop.eup %2983  ;;  %v869_v18 = vadd.f32 1.0, %v2982_v36  ;;  %v769_v36 = vsub.f32 0.0, %v3901_v58  ;;  %5160 = vst [vmem:[#allocation46_spill] sm:$0xff] %v3931_v15  ;;  %v816_v41 = vmul.f32 1.442695, %v771_v52 }
 0x24f   : > { %2995 = vpow2.f32 %v796_v37  ;;  %v2986_v21 = vpop.eup %2985  ;;  %v870_v42 = vadd.f32 1.0, %v2984_v57  ;;  %v768_v37 = vsub.f32 0.0, %v3898_v22  ;;  %v806_v57 = vmul.f32 1.442695, %v766_v28 }
 0x250   : > { %2997 = vpow2.f32 %v798_v19  ;;  %v871_v11 = vadd.f32 1.0, %v2986_v21  ;;  %v804_v19 = vmul.f32 1.442695, %v765_v4  ;;  %v3936_v4 = vpop.permute.xlu0 %1116  ;;  %v777_v28 = vsub.f32 0.0, %v3922_v35 }
 0x251   : > { %2999 = vpow2.f32 %v800_v2  ;;  %v808_v2 = vmul.f32 1.442695, %v767_v39  ;;  %v810_v63 = vmul.f32 1.442695, %v768_v37  ;;  %5161 = vst [vmem:[#allocation47_spill] sm:$0xff] %v3936_v4  ;;  %v778_v39 = vsub.f32 0.0, %v3813_v51  ;;  %v3956_v26 = vpop.permute.xlu1 %1121 }
 0x252   : > { %3001 = vrcp.f32 %v869_v18  ;;  %v818_v17 = vmul.f32 1.442695, %v772_v62  ;;  %v828_v38 = vmul.f32 1.442695, %v777_v28  ;;  %5162 = vst [vmem:[#allocation48_spill] sm:$0xff] %v3956_v26  ;;  %v785_v52 = vsub.f32 0.0, %v3836_v25 }
 0x253   : > { %3003 = vrcp.f32 %v870_v42  ;;  %v812_v42 = vmul.f32 1.442695, %v769_v36  ;;  %v830_v15 = vmul.f32 1.442695, %v778_v39  ;;  %v788_v26 = vsub.f32 0.0, %v3845_v50 }
 0x254   : > { %3005 = vrcp.f32 %v871_v11  ;;  %v3960_v62 = vpop.permute.xlu0 %1126  ;;  %v834_v25 = vmul.f32 1.442695, %v780_v47 }
 0x255   : > { %v3926_v49 = vpop.eup %2987  ;;  %3007 = vpow2.f32 %v826_v29  ;;  %v814_v29 = vmul.f32 1.442695, %v770_v3  ;;  %v783_v3 = vsub.f32 0.0, %v3830_v16  ;;  %5163 = vst [vmem:[#allocation49_spill] sm:$0xff] %v3960_v62  ;;  %v787_v16 = vsub.f32 0.0, %v3842_v8 }
 0x256   : > { %v3929_v18 = vpop.eup %2989  ;;  %3009 = vpow2.f32 %v802_v12  ;;  %v779_v12 = vsub.f32 0.0, %v3816_v60 }
 0x257   : > { %v3934_v21 = vpop.eup %2991  ;;  %3011 = vpow2.f32 %v804_v19  ;;  %v781_v19 = vsub.f32 0.0, %v3824_v7  ;;  %v848_v6 = vmul.f32 1.442695, %v787_v16  ;;  %v3999_v16 = vmul.f32 %v3926_v49, %v3753_v20 }
 0x258   : > { %v3939_v11 = vpop.eup %2993  ;;  %3013 = vpow2.f32 %v806_v57  ;;  %v784_v57 = vsub.f32 0.0, %v3833_v23  ;;  %v832_v23 = vmul.f32 1.442695, %v779_v12 }
 0x259   : > { %v3944_v37 = vpop.eup %2995  ;;  %3015 = vpow2.f32 %v808_v2  ;;  %v786_v2 = vsub.f32 0.0, %v3839_v0  ;;  %5169 = vst [vmem:[#allocation53_spill] sm:$0xff] %v3999_v16 }
 0x25a   : > { %v3948_v36 = vpop.eup %2997  ;;  %3017 = vpow2.f32 %v810_v63  ;;  %v842_v50 = vmul.f32 1.442695, %v784_v57  ;;  %v844_v57 = vmul.f32 1.442695, %v785_v52 }
 0x25b   : > { %v3952_v44 = vpop.eup %2999  ;;  %3019 = vpow2.f32 %v812_v42  ;;  %v846_v60 = vmul.f32 1.442695, %v786_v2  ;;  %v856_v2 = vadd.f32 1.0, %v3939_v11 }
 0x25c   : > { %v3002_v4 = vpop.eup %3001  ;;  %3021 = vpow2.f32 %v814_v29  ;;  %v859_v11 = vadd.f32 1.0, %v3952_v44 }
 0x25d   : > { %v3004_v32 = vpop.eup %3003  ;;  %v3963_v63 = vmul.f32 %v3002_v4, %v3800_v5  ;;  %3023 = vpow2.f32 %v816_v41  ;;  %v836_v5 = vmul.f32 1.442695, %v781_v19  ;;  %v840_v19 = vmul.f32 1.442695, %v783_v3 }
 0x25e   : > { %v3006_v28 = vpop.eup %3005  ;;  %v3967_v42 = vmul.f32 %v3004_v32, %v3803_v55  ;;  %3025 = vpow2.f32 %v818_v17  ;;  %v838_v17 = vmul.f32 1.442695, %v782_v40 }
 0x25f   : > { %5164 = vst [vmem:[#allocation50_spill] sm:$0xff] %v3963_v63  ;;  %v3008_v39 = vpop.eup %3007  ;;  %v3971_v29 = vmul.f32 %v3006_v28, %v3806_v33  ;;  %v5061_v62 = vrot.slane %v3963_v63, 7  ;;  %3027 = vpow2.f32 %v828_v38  ;;  %v1132_v28 = vpop.permute.xlu1 %1131 }
 0x260   : > { %5165 = vst [vmem:[#allocation51_spill] sm:$0xff] %v3967_v42  ;;  %v3010_v4 = vpop.eup %3009  ;;  %v966_v12 = vrot.slane %v3967_v42, 7  ;;  %v872_v8 = vadd.f32 1.0, %v3008_v39  ;;  %3029 = vpow2.f32 %v830_v15  ;;  %v1137_v39 = vpop.permute.xlu0 %1136 }
 0x261   : > { %5166 = vst [vmem:[#allocation52_spill] sm:$0xff] %v3971_v29  ;;  %v3012_v32 = vpop.eup %3011  ;;  %v5066_v55 = vrot.slane %v3971_v29, 7  ;;  %3031 = vpow2.f32 %v832_v23  ;;  %v5167_v40 = vrot.slane %v3971_v29, 1  ;;  %v5168_v23 = vrot.slane %v3967_v42, 1 }
 0x262   : > { %v3014_v33 = vpop.eup %3013  ;;  %v1000_v38 = vsel %vm984_vm5, %v5061_v62, %v966_v12  ;;  %3033 = vrcp.f32 %v872_v8  ;;  %v860_v20 = vadd.f32 1.0, %v3010_v4 }
 0x263   : > { %v3016_v41 = vpop.eup %3015  ;;  %v999_v15 = vsel %vm984_vm5, %v966_v12, %v5066_v55  ;;  %v1225_v47 = vmul.f32 %v1132_v28, %v1000_v38  ;;  %v1288_v0 = vsel %vm1273_vm4, %v5168_v23, %v5167_v40  ;;  %3035 = vpow2.f32 %v834_v25 }
 0x264   : > { %v3018_v62 = vpop.eup %3017  ;;  %v1226_v3 = vmul.f32 %v1137_v39, %v999_v15  ;;  %3037 = vpow2.f32 %v836_v5  ;;  %v850_v38 = vmul.f32 1.442695, %v788_v26  ;;  %v855_v25 = vadd.f32 1.0, %v3934_v21  ;;  %v1057_v23 = vpop.permute.xlu0 %1056 }
 0x265   : > { %v3020_v8 = vpop.eup %3019  ;;  %3039 = vpow2.f32 %v838_v17  ;;  %v858_v21 = vadd.f32 1.0, %v3948_v36  ;;  %v862_v39 = vadd.f32 1.0, %v3014_v33  ;;  %v4015_v44 = vmul.f32 %v3680_v27, %v1288_v0 }
 0x266   : > { %v3022_v14 = vpop.eup %3021  ;;  %v1477_v7 = vpack.c.bf16 %v1226_v3, %v1225_v47  ;;  %3041 = vpow2.f32 %v840_v19  ;;  %v857_v47 = vadd.f32 1.0, %v3944_v37  ;;  %v950_v37 = vrot.slane %v3999_v16, 7 }
 0x267   : > { %v3024_v28 = vpop.eup %3023  ;;  %3043 = vpow2.f32 %v842_v50  ;;  %v1052_v50 = vpop.permute.xlu1 %1051  ;;  %v861_v19 = vadd.f32 1.0, %v3012_v32  ;;  %5172 = vst [vmem:[#allocation56_spill] sm:$0xff] %v4015_v44  ;;  %v864_v3 = vadd.f32 1.0, %v3018_v62  ;;  %v5173_v32 = vrot.slane %v3971_v29, 1 }
 0x268   : > { %v3026_v55 = vpop.eup %3025  ;;  %1493 = vst.msk [vmem:[#allocation2 + $0x48] sm:$0xff] %vm337_vm1, %v1477_v7  ;;  %3045 = vpow2.f32 %v844_v57  ;;  %v4004_v7 = vmul.f32 %v3929_v18, %v3769_v34 }
 0x269   : > { %v3028_v52 = vpop.eup %3027  ;;  %3047 = vpow2.f32 %v846_v60 }
 0x26a   : > { %v3030_v5 = vpop.eup %3029  ;;  %3049 = vpow2.f32 %v848_v6  ;;  %5170 = vst [vmem:[#allocation54_spill] sm:$0xff] %v4004_v7  ;;  %v5067_v18 = vrot.slane %v4004_v7, 7 }
 0x26b   : > { %v3032_v26 = vpop.eup %3031  ;;  %3051 = vpow2.f32 %v850_v38  ;;  %v1142_v40 = vpop.permute.xlu1 %1141  ;;  %v865_v38 = vadd.f32 1.0, %v3020_v8 }
 0x26c   : > { %v3034_v60 = vpop.eup %3033  ;;  %3053 = vrcp.f32 %v855_v25  ;;  %v1016_v62 = vsel %vm984_vm5, %v5067_v18, %v950_v37 }
 0x26d   : > { %v3036_v17 = vpop.eup %3035  ;;  %v4009_v49 = vmul.f32 %v3034_v60, %v3876_v56  ;;  %3055 = vrcp.f32 %v856_v2  ;;  %v863_v56 = vadd.f32 1.0, %v3016_v41  ;;  %v866_v41 = vadd.f32 1.0, %v3022_v14 }
 0x26e   : > { %v3038_v6 = vpop.eup %3037  ;;  %3057 = vrcp.f32 %v857_v47  ;;  %v867_v2 = vadd.f32 1.0, %v3024_v28  ;;  %v5070_v14 = vrot.slane %v3963_v63, 1 }
 0x26f   : > { %5171 = vst [vmem:[#allocation55_spill] sm:$0xff] %v4009_v49  ;;  %v3040_v34 = vpop.eup %3039  ;;  %v5068_v36 = vrot.slane %v4009_v49, 1  ;;  %3059 = vrcp.f32 %v858_v21  ;;  %v868_v21 = vadd.f32 1.0, %v3026_v55  ;;  %v875_v55 = vadd.f32 1.0, %v3032_v26 }
 0x270   : > { %v3042_v15 = vpop.eup %3041  ;;  %3061 = vrcp.f32 %v859_v11  ;;  %v1209_v11 = vmul.f32 %v1052_v50, %v1016_v62  ;;  %v877_v26 = vadd.f32 1.0, %v3038_v6  ;;  %v878_v6 = vadd.f32 1.0, %v3040_v34 }
 0x271   : > { %v3044_v4 = vpop.eup %3043  ;;  %v1287_v57 = vsel %vm1273_vm4, %v5173_v32, %v5068_v36  ;;  %3063 = vrcp.f32 %v860_v20  ;;  %v879_v12 = vadd.f32 1.0, %v3042_v15 }
 0x272   : > { %v3046_v33 = vpop.eup %3045  ;;  %3065 = vrcp.f32 %v861_v19  ;;  %v4024_v27 = vmul.f32 %v3682_v30, %v1287_v57  ;;  %v5069_v30 = vrot.slane %v4009_v49, 7  ;;  %v873_v19 = vadd.f32 1.0, %v3028_v52  ;;  %v4040_v57 = vpop.permute.xlu0 %1146 }
 0x273   : > { %v3048_v0 = vpop.eup %3047  ;;  %3067 = vrcp.f32 %v862_v39  ;;  %v874_v39 = vadd.f32 1.0, %v3030_v5  ;;  %v881_v20 = vadd.f32 1.0, %v3046_v33  ;;  %v5179_v33 = vrot.slane %v3999_v16, 1 }
 0x274   : > { %5174 = vst [vmem:[#allocation57_spill] sm:$0xff] %v4024_v27  ;;  %v3050_v25 = vpop.eup %3049  ;;  %3069 = vrcp.f32 %v863_v56  ;;  %v1062_v56 = vpop.permute.xlu1 %1061 }
 0x275   : > { %v3052_v47 = vpop.eup %3051  ;;  %3071 = vrcp.f32 %v864_v3  ;;  %v876_v3 = vadd.f32 1.0, %v3036_v17 }
 0x276   : > { %v3054_v60 = vpop.eup %3053  ;;  %3073 = vrcp.f32 %v865_v38  ;;  %v5177_v38 = vrot.slane %v3971_v29, 7 }
 0x277   : > { %v3056_v32 = vpop.eup %3055  ;;  %v4038_v28 = vmul.f32 %v3054_v60, %v3853_v1  ;;  %3075 = vrcp.f32 %v866_v41  ;;  %v5178_v60 = vrot.slane %v3967_v42, 1 }
 0x278   : > { %v3058_v18 = vpop.eup %3057  ;;  %v4043_v50 = vmul.f32 %v3056_v32, %v3856_v13  ;;  %3077 = vrcp.f32 %v867_v2  ;;  %v998_v1 = vsel %vm984_vm5, %v5177_v38, %v5069_v30  ;;  %v880_v30 = vadd.f32 1.0, %v3044_v4 }
 0x279   : > { %5175 = vst [vmem:[#allocation58_spill] sm:$0xff] %v4038_v28  ;;  %v3060_v52 = vpop.eup %3059  ;;  %v951_v5 = vrot.slane %v4038_v28, 7  ;;  %v1242_v62 = vrot.slane %v4038_v28, 1  ;;  %3079 = vrcp.f32 %v868_v21  ;;  %v4061_v32 = vsel %vm1273_vm4, %v5070_v14, %v5178_v60  ;;  %v4075_v14 = vpop.permute.xlu1 %1151 }
 0x27a   : > { %5176 = vst [vmem:[#allocation59_spill] sm:$0xff] %v4043_v50  ;;  %v3062_v41 = vpop.eup %3061  ;;  %v952_v17 = vrot.slane %v4043_v50, 7  ;;  %3081 = vrcp.f32 %v873_v19  ;;  %v5071_v13 = vrot.slane %v4043_v50, 1  ;;  %v4067_v19 = vmul.f32 %v1142_v40, %v998_v1 }
 0x27b   : > { %v3064_v2 = vpop.eup %3063  ;;  %v1015_v21 = vsel %vm984_vm5, %v950_v37, %v951_v5  ;;  %3083 = vrcp.f32 %v874_v39  ;;  %v4077_v37 = vpop.permute.xlu0 %1066  ;;  %v882_v39 = vadd.f32 1.0, %v3048_v0  ;;  %v4092_v0 = vmul.f32 %v3060_v52, %v3764_v10 }
 0x27c   : > { %v3066_v38 = vpop.eup %3065  ;;  %v1210_v8 = vmul.f32 %v1057_v23, %v1015_v21  ;;  %3085 = vrcp.f32 %v875_v55  ;;  %v4073_v60 = vsel %vm1273_vm4, %v1242_v62, %v5071_v13  ;;  %v1014_v15 = vsel %vm984_vm5, %v951_v5, %v952_v17 }
 0x27d   : > { %v3068_v36 = vpop.eup %3067  ;;  %3087 = vrcp.f32 %v876_v3  ;;  %v883_v23 = vadd.f32 1.0, %v3050_v25  ;;  %v1304_v55 = vsel %vm1273_vm4, %v5179_v33, %v1242_v62  ;;  %v4088_v3 = vmul.f32 %v3058_v18, %v3861_v53 }
 0x27e   : > { %v3070_v34 = vpop.eup %3069  ;;  %v1469_v40 = vpack.c.bf16 %v1210_v8, %v1209_v11  ;;  %3089 = vrcp.f32 %v877_v26  ;;  %v884_v8 = vadd.f32 1.0, %v3052_v47  ;;  %v4095_v11 = vmul.f32 %v3062_v41, %v3773_v9 }
 0x27f   : > { %v3072_v4 = vpop.eup %3071  ;;  %3091 = vrcp.f32 %v878_v6  ;;  %v4097_v5 = vmul.f32 %v1062_v56, %v1014_v15  ;;  %v4100_v62 = vmul.f32 %v3064_v2, %v3776_v43  ;;  %v4103_v53 = vmul.f32 %v3066_v38, %v3783_v48  ;;  %v5193_v48 = vld [vmem:[#allocation33_spill] sm:$0xff]  ;;  %v5195_v6 = vld [vmem:[#allocation34_spill] sm:$0xff] }
 0x280   : > { %v3074_v1 = vpop.eup %3073  ;;  %1485 = vst.msk [vmem:[#allocation2 + $0x8] sm:$0xff] %vm337_vm1, %v1469_v40  ;;  %3093 = vrcp.f32 %v879_v12  ;;  %v4106_v12 = vmul.f32 %v3068_v36, %v3786_v61  ;;  %v4109_v10 = vmul.f32 %v3070_v34, %v3894_v46  ;;  %v4112_v9 = vmul.f32 %v3684_v31, %v1304_v55  ;;  %v4123_v61 = vpop.permute.xlu0 %1156  ;;  %v5194_v56 = vld [vmem:[#allocation29_spill] sm:$0xff]  ;;  %v5202_v34 = vld [vmem:[#allocation38_spill] sm:$0xff] }
 0x281   : > { %v3076_v25 = vpop.eup %3075  ;;  %3095 = vrcp.f32 %v880_v30  ;;  %v4115_v30 = vmul.f32 %v3072_v4, %v3898_v22  ;;  %v4118_v43 = vmul.f32 %v3074_v1, %v3901_v58  ;;  %v5191_v55 = vrot.slane %v4009_v49, 7 }
 0x282   : > { %v3078_v18 = vpop.eup %3077  ;;  %3097 = vrcp.f32 %v881_v20  ;;  %5180 = vst [vmem:[#allocation60_spill] sm:$0xff] %v4106_v12  ;;  %5181 = vst [vmem:[#allocation61_spill] sm:$0xff] %v4109_v10  ;;  %v4121_v20 = vpop.permute.xlu1 %1427  ;;  %v4126_v46 = vmul.f32 %v3076_v25, %v3905_v54  ;;  %v5218_v42 = vrot.slane %v4106_v12, 1 }
 0x283   : > { %5182 = vst [vmem:[#allocation62_spill] sm:$0xff] %v4112_v9  ;;  %v3080_v47 = vpop.eup %3079  ;;  %3099 = vrcp.f32 %v882_v39  ;;  %5183 = vst [vmem:[#allocation63_spill] sm:$0xff] %v4115_v30  ;;  %v4134_v52 = vmul.f32 %v3078_v18, %v3908_v45  ;;  %v5190_v39 = vld [vmem:[#allocation30_spill] sm:$0xff]  ;;  %v5212_v28 = vrot.slane %v4118_v43, 7  ;;  %v5241_v9 = vld [vmem:[#allocation47_spill] sm:$0xff] }
 0x284   : > { %5184 = vst [vmem:[#allocation64_spill] sm:$0xff] %v4118_v43  ;;  %5185 = vst [vmem:[#allocation65_spill] sm:$0xff] %v4121_v20  ;;  %v3082_v36 = vpop.eup %3081  ;;  %3101 = vrcp.f32 %v883_v23  ;;  %v4137_v41 = vmul.f32 %v3080_v47, %v3914_v24 }
 0x285   : > { %5186 = vst [vmem:[#allocation66_spill] sm:$0xff] %v4126_v46  ;;  %v3084_v22 = vpop.eup %3083  ;;  %3103 = vrcp.f32 %v884_v8  ;;  %v4131_v58 = vmul.f32 %v3082_v36, %v3922_v35  ;;  %5188 = vst [vmem:[#allocation68_spill] sm:$0xff] %v4134_v52  ;;  %v963_v8 = vrot.slane %v4134_v52, 7  ;;  %v4164_v36 = vpop.permute.xlu0 %1071  ;;  %v5228_v52 = vrot.slane %v4092_v0, 1 }
 0x286   : > { %5189 = vst [vmem:[#allocation69_spill] sm:$0xff] %v4137_v41  ;;  %v3086_v26 = vpop.eup %3085  ;;  %v4140_v2 = vmul.f32 %v3084_v22, %v3813_v51  ;;  %v4162_v47 = vpop.permute.xlu1 %1076 }
 0x287   : > { %5187 = vst [vmem:[#allocation67_spill] sm:$0xff] %v4131_v58  ;;  %v3088_v38 = vpop.eup %3087  ;;  %v969_v35 = vrot.slane %v4131_v58, 7  ;;  %v4180_v21 = vmul.f32 %v3086_v26, %v5194_v56  ;;  %v5198_v56 = vld [vmem:[#allocation36_spill] sm:$0xff] }
 0x288   : > { %v3090_v40 = vpop.eup %3089  ;;  %v4150_v15 = vmul.f32 %v3088_v38, %v5190_v39  ;;  %v5072_v51 = vrot.slane %v4140_v2, 7  ;;  %v5192_v39 = vld [vmem:[#allocation32_spill] sm:$0xff]  ;;  %v1261_v4 = vrot.slane %v4140_v2, 1 }
 0x289   : > { %v3092_v33 = vpop.eup %3091  ;;  %v997_v1 = vsel %vm984_vm5, %v5191_v55, %v969_v35  ;;  %v4168_v13 = vmul.f32 %v3090_v40, %v5192_v39  ;;  %v5073_v40 = vrot.slane %v4088_v3, 7 }
 0x28a   : > { %v3094_v22 = vpop.eup %3093  ;;  %v1228_v38 = vmul.f32 %v4040_v57, %v997_v1  ;;  %v4171_v54 = vmul.f32 %v3092_v33, %v5193_v48  ;;  %v4177_v55 = vsel %vm984_vm5, %v969_v35, %v5072_v51  ;;  %v1260_v57 = vrot.slane %v4131_v58, 1  ;;  %v5196_v33 = vld [vmem:[#allocation35_spill] sm:$0xff] }
 0x28b   : > { %v3096_v31 = vpop.eup %3095  ;;  %v4183_v24 = vmul.f32 %v3094_v22, %v5195_v6  ;;  %v1263_v51 = vrot.slane %v4150_v15, 1 }
 0x28c   : > { %v3098_v1 = vpop.eup %3097  ;;  %v1478_v48 = vpack.c.bf16 %v1228_v38, %v4067_v19  ;;  %v4189_v39 = vmul.f32 %v3096_v31, %v5196_v33  ;;  %v1265_v6 = vrot.slane %v4171_v54, 1  ;;  %v1013_v19 = vsel %vm984_vm5, %v952_v17, %v5073_v40  ;;  %v5200_v38 = vld [vmem:[#allocation37_spill] sm:$0xff] }
 0x28d   : > { %v3100_v23 = vpop.eup %3099  ;;  %v4194_v26 = vmul.f32 %v3098_v1, %v5198_v56  ;;  %v1266_v22 = vrot.slane %v4183_v24, 1  ;;  %v1264_v1 = vrot.slane %v4168_v13, 1  ;;  %v1212_v35 = vmul.f32 %v4077_v37, %v1013_v19  ;;  %v5206_v37 = vld [vmem:[#allocation12_spill] sm:$0xff] }
 0x28e   : > { %5197 = vst [vmem:[#allocation30_spill] sm:$0xff] %v4189_v39  ;;  %v3102_v31 = vpop.eup %3101  ;;  %v4205_v33 = vmul.f32 %v3100_v23, %v5200_v38  ;;  %1494 = vst.msk [vmem:[#allocation2 + $0x50] sm:$0xff] %vm337_vm1, %v1478_v48  ;;  %v1267_v56 = vrot.slane %v4189_v39, 1  ;;  %v1262_v17 = vrot.slane %v4180_v21, 1  ;;  %v4217_v23 = vpop.permute.xlu1 %1161  ;;  %v5204_v48 = vld [vmem:[#allocation39_spill] sm:$0xff]  ;;  %v4227_v19 = vmul.f32 %v5206_v37, %v4073_v60  ;;  %v5242_v39 = vld [vmem:[#allocation13_spill] sm:$0xff] }
 0x28f   : > { %5199 = vst [vmem:[#allocation32_spill] sm:$0xff] %v4194_v26  ;;  %v3104_v18 = vpop.eup %3103  ;;  %v4212_v45 = vmul.f32 %v3102_v31, %v5202_v34  ;;  %v1268_v40 = vrot.slane %v4194_v26, 1  ;;  %v4219_v38 = vpop.permute.xlu0 %1166  ;;  %v1470_v34 = vpack.c.bf16 %v1212_v35, %v4097_v5  ;;  %v1281_v60 = vsel %vm1273_vm4, %v1264_v1, %v1265_v6 }
 0x290   : > { %5201 = vst [vmem:[#allocation33_spill] sm:$0xff] %v4205_v33  ;;  %v4222_v25 = vmul.f32 %v3104_v18, %v5204_v48  ;;  %v1269_v20 = vrot.slane %v4205_v33, 1  ;;  %5207 = vst [vmem:[#allocation35_spill] sm:$0xff] %v4227_v19  ;;  %v1279_v44 = vsel %vm1273_vm4, %v1266_v22, %v1267_v56  ;;  %v1280_v18 = vsel %vm1273_vm4, %v1265_v6, %v1266_v22 }
 0x291   : > { %5203 = vst [vmem:[#allocation29_spill] sm:$0xff] %v4212_v45  ;;  %v1270_v31 = vrot.slane %v4212_v45, 1  ;;  %v1278_v7 = vsel %vm1273_vm4, %v1267_v56, %v1268_v40  ;;  %v1282_v5 = vsel %vm1273_vm4, %v1263_v51, %v1264_v1  ;;  %1486 = vst.msk [vmem:[#allocation2 + $0x10] sm:$0xff] %vm337_vm1, %v1470_v34  ;;  %v1283_v56 = vsel %vm1273_vm4, %v1262_v17, %v1263_v51 }
 0x292   : > { %5205 = vst [vmem:[#allocation34_spill] sm:$0xff] %v4222_v25  ;;  %v5081_v48 = vrot.slane %v4222_v25, 1  ;;  %v1277_v27 = vsel %vm1273_vm4, %v1268_v40, %v1269_v20  ;;  %v1284_v22 = vsel %vm1273_vm4, %v1261_v4, %v1262_v17  ;;  %v1285_v40 = vsel %vm1273_vm4, %v1260_v57, %v1261_v4 }
 0x293   : > { %v1276_v35 = vsel %vm1273_vm4, %v1269_v20, %v1270_v31  ;;  %v5208_v37 = vrot.slane %v4009_v49, 1  ;;  %v5209_v1 = vrot.slane %v4137_v41, 7  ;;  %v5210_v20 = vrot.slane %v4126_v46, 7  ;;  %v4295_v29 = vpop.permute.xlu0 %1086 }
 0x294   : > { %v1275_v4 = vsel %vm1273_vm4, %v1270_v31, %v5081_v48  ;;  %5220 = vst [vmem:[#allocation37_spill] sm:$0xff] %v4295_v29  ;;  %v5230_v46 = vrot.slane %v4109_v10, 7  ;;  %v5232_v45 = vrot.slane %v4088_v3, 1  ;;  %v5234_v33 = vrot.slane %v4043_v50, 1  ;;  %v5246_v29 = vld [vmem:[#allocation49_spill] sm:$0xff] }
 0x295   : > { %v1286_v6 = vsel %vm1273_vm4, %v5208_v37, %v1260_v57  ;;  %v1002_v34 = vsel %vm984_vm5, %v963_v8, %v5209_v1  ;;  %v1003_v51 = vsel %vm984_vm5, %v5210_v20, %v963_v8  ;;  %v5211_v17 = vmov %v5210_v20 }
 0x296   : > { %v1004_v57 = vsel %vm984_vm5, %v5212_v28, %v5211_v17  ;;  %v5213_v37 = vmov %v5212_v28  ;;  %v5214_v1 = vrot.slane %v4115_v30, 7  ;;  %v5215_v8 = vrot.slane %v4115_v30, 1  ;;  %v4293_v17 = vpop.permute.xlu1 %1081 }
 0x297   : > { %v5216_v20 = vrot.slane %v4109_v10, 1  ;;  %5219 = vst [vmem:[#allocation36_spill] sm:$0xff] %v4293_v17  ;;  %v5237_v10 = vld [vmem:[#allocation46_spill] sm:$0xff]  ;;  %v1229_v50 = vmul.f32 %v4075_v14, %v4177_v55  ;;  %v1222_v19 = vmul.f32 %v5241_v9, %v1003_v51  ;;  %v5247_v55 = vld [vmem:[#allocation15_spill] sm:$0xff] }
 0x298   : > { %v1005_v16 = vsel %vm984_vm5, %v5214_v1, %v5213_v37  ;;  %v5221_v37 = vmov %v5218_v42  ;;  %v5222_v1 = vrot.slane %v4103_v53, 1  ;;  %v1221_v26 = vmul.f32 %v5237_v10, %v1004_v57  ;;  %v5243_v10 = vld [vmem:[#allocation45_spill] sm:$0xff] }
 0x299   : > { %v1295_v31 = vsel %vm1273_vm4, %v5216_v20, %v5215_v8  ;;  %v5217_v48 = vmov %v5216_v20  ;;  %v5224_v20 = vrot.slane %v4100_v62, 1 }
 0x29a   : > { %v1296_v28 = vsel %vm1273_vm4, %v5218_v42, %v5217_v48  ;;  %v1297_v25 = vsel %vm1273_vm4, %v5222_v1, %v5221_v37  ;;  %v5223_v8 = vmov %v5222_v1  ;;  %v5226_v48 = vrot.slane %v4095_v11, 1  ;;  %v4377_v9 = vpop.permute.xlu1 %1171 }
 0x29b   : > { %v1298_v58 = vsel %vm1273_vm4, %v5224_v20, %v5223_v8  ;;  %v5225_v42 = vmov %v5224_v20  ;;  %v5229_v1 = vrot.slane %v4115_v30, 7  ;;  %v5231_v20 = vmov %v5228_v52 }
 0x29c   : > { %v1299_v49 = vsel %vm1273_vm4, %v5226_v48, %v5225_v42  ;;  %v5227_v43 = vmov %v5226_v48  ;;  %v1301_v42 = vsel %vm1273_vm4, %v5232_v45, %v5231_v20  ;;  %v5233_v48 = vmov %v5232_v45  ;;  %v5238_v45 = vld [vmem:[#allocation11_spill] sm:$0xff] }
 0x29d   : > { %v1300_v37 = vsel %vm1273_vm4, %v5228_v52, %v5227_v43  ;;  %v1006_v8 = vsel %vm984_vm5, %v5230_v46, %v5229_v1  ;;  %v1302_v43 = vsel %vm1273_vm4, %v5234_v33, %v5233_v48  ;;  %v5235_v30 = vrot.slane %v3963_v63, 7 }
 0x29e   : > { %v5236_v46 = vrot.slane %v4137_v41, 7  ;;  %v4350_v20 = vmul.f32 %v5238_v45, %v4061_v32  ;;  %v5239_v33 = vrot.slane %v3963_v63, 1  ;;  %v5240_v48 = vrot.slane %v4137_v41, 1  ;;  %v5245_v45 = vld [vmem:[#allocation48_spill] sm:$0xff] }
 0x29f   : > { %v1219_v57 = vmul.f32 %v5243_v10, %v1006_v8  ;;  %v1223_v12 = vmul.f32 %v5245_v45, %v1002_v34  ;;  %v4369_v63 = vmul.f32 %v5247_v55, %v1302_v43  ;;  %v5248_v41 = vld [vmem:[#allocation16_spill] sm:$0xff]  ;;  %v5254_v43 = vld [vmem:[#allocation27_spill] sm:$0xff] }
 0x2a0   : > { %v1001_v1 = vsel %vm984_vm5, %v5236_v46, %v5235_v30  ;;  %v1290_v52 = vsel %vm1273_vm4, %v5240_v48, %v5239_v33  ;;  %v4362_v30 = vmul.f32 %v5242_v39, %v1286_v6  ;;  %v5244_v46 = vld [vmem:[#allocation44_spill] sm:$0xff]  ;;  %v4372_v17 = vmul.f32 %v5248_v41, %v1301_v42  ;;  %v5249_v33 = vld [vmem:[#allocation19_spill] sm:$0xff]  ;;  %v4379_v39 = vpop.permute.xlu0 %1176 }
 0x2a1   : > { %v1220_v32 = vmul.f32 %v5244_v46, %v1005_v16  ;;  %v1224_v14 = vmul.f32 %v5246_v29, %v1001_v1  ;;  %v4375_v48 = vmul.f32 %v5249_v33, %v1300_v37  ;;  %v5250_v6 = vld [vmem:[#allocation20_spill] sm:$0xff]  ;;  %v5251_v16 = vld [vmem:[#allocation23_spill] sm:$0xff]  ;;  %v4391_v1 = vmul.f32 %v5254_v43, %v1296_v28  ;;  %v5256_v37 = vld [vmem:[#allocation10_spill] sm:$0xff] }
 0x2a2   : > { %v4382_v51 = vmul.f32 %v5250_v6, %v1299_v49  ;;  %v4385_v34 = vmul.f32 %v5251_v16, %v1298_v58  ;;  %v5253_v29 = vld [vmem:[#allocation24_spill] sm:$0xff]  ;;  %v4397_v10 = vmul.f32 %v5256_v37, %v1290_v52  ;;  %v5257_v46 = vld [vmem:[#allocation14_spill] sm:$0xff]  ;;  %v5258_v49 = vld [vmem:[#allocation17_spill] sm:$0xff] }
 0x2a3   : > { %v4388_v8 = vmul.f32 %v5253_v29, %v1297_v25  ;;  %v5255_v41 = vld [vmem:[#allocation28_spill] sm:$0xff]  ;;  %v4400_v45 = vmul.f32 %v5257_v46, %v1285_v40  ;;  %v4403_v55 = vmul.f32 %v5258_v49, %v1284_v22  ;;  %v5259_v58 = vld [vmem:[#allocation18_spill] sm:$0xff]  ;;  %v5260_v25 = vld [vmem:[#allocation21_spill] sm:$0xff] }
 0x2a4   : > { %5252 = vst [vmem:[#allocation38_spill] sm:$0xff] %v4385_v34  ;;  %v4394_v42 = vmul.f32 %v5255_v41, %v1295_v31  ;;  %v4406_v33 = vmul.f32 %v5259_v58, %v1283_v56  ;;  %v4409_v6 = vmul.f32 %v5260_v25, %v1282_v5  ;;  %v5261_v28 = vld [vmem:[#allocation22_spill] sm:$0xff]  ;;  %v5262_v31 = vld [vmem:[#allocation25_spill] sm:$0xff]  ;;  %v5264_v40 = vld [vmem:[#allocation31_spill] sm:$0xff]  ;;  %v1474_v58 = vpack.c.bf16 %v1220_v32, %v1219_v57 }
 0x2a5   : > { %v4412_v16 = vmul.f32 %v5261_v28, %v1281_v60  ;;  %v4415_v29 = vmul.f32 %v5262_v31, %v1280_v18  ;;  %v5263_v52 = vld [vmem:[#allocation26_spill] sm:$0xff]  ;;  %v4421_v41 = vmul.f32 %v5264_v40, %v1278_v7  ;;  %v5266_v22 = vld [vmem:[#allocation40_spill] sm:$0xff]  ;;  %v5268_v56 = vld [vmem:[#allocation41_spill] sm:$0xff]  ;;  %v971_v60 = vrot.slane %v4180_v21, 7  ;;  %v1092_v28 = vpop.permute.xlu1 %1091 }
 0x2a6   : > { %v4418_v43 = vmul.f32 %v5263_v52, %v1279_v44  ;;  %v4424_v37 = vmul.f32 %v5266_v22, %v1277_v27  ;;  %v4427_v46 = vmul.f32 %v5268_v56, %v1276_v35  ;;  %v5269_v5 = vld [vmem:[#allocation42_spill] sm:$0xff]  ;;  %v1475_v18 = vpack.c.bf16 %v1222_v19, %v1221_v26  ;;  %v1097_v35 = vpop.permute.xlu0 %1096  ;;  %1490 = vst.msk [vmem:[#allocation2 + $0x30] sm:$0xff] %vm337_vm1, %v1474_v58 }
 0x2a7   : > { %5265 = vst [vmem:[#allocation39_spill] sm:$0xff] %v4421_v41  ;;  %v4430_v49 = vmul.f32 %v5269_v5, %v1275_v4  ;;  %v1476_v25 = vpack.c.bf16 %v1224_v14, %v1223_v12  ;;  %v5270_v31 = vrot.slane %v4140_v2, 7  ;;  %v954_v56 = vrot.slane %v4092_v0, 7 }
 0x2a8   : > { %5267 = vst [vmem:[#allocation12_spill] sm:$0xff] %v4424_v37  ;;  %1491 = vst.msk [vmem:[#allocation2 + $0x38] sm:$0xff] %vm337_vm1, %v1475_v18  ;;  %v955_v5 = vrot.slane %v4095_v11, 7  ;;  %v972_v58 = vrot.slane %v4150_v15, 7  ;;  %v973_v18 = vrot.slane %v4168_v13, 7  ;;  %v975_v40 = vrot.slane %v4183_v24, 7 }
 0x2a9   : > { %v995_v4 = vsel %vm984_vm5, %v5270_v31, %v971_v60  ;;  %1492 = vst.msk [vmem:[#allocation2 + $0x40] sm:$0xff] %vm337_vm1, %v1476_v25  ;;  %v956_v25 = vrot.slane %v4100_v62, 7  ;;  %v957_v31 = vrot.slane %v4103_v53, 7  ;;  %v1182_v7 = vpop.permute.xlu1 %1181 }
 0x2aa   : > { %v1230_v12 = vmul.f32 %v4123_v61, %v995_v4  ;;  %v974_v4 = vrot.slane %v4171_v54, 7  ;;  %v1011_v61 = vsel %vm984_vm5, %v954_v56, %v955_v5  ;;  %v994_v27 = vsel %vm984_vm5, %v971_v60, %v972_v58  ;;  %v1187_v26 = vpop.permute.xlu0 %1186 }
 0x2ab   : > { %v1214_v44 = vmul.f32 %v4162_v47, %v1011_v61  ;;  %v993_v14 = vsel %vm984_vm5, %v972_v58, %v973_v18  ;;  %v1009_v60 = vsel %vm984_vm5, %v956_v25, %v957_v31  ;;  %v5272_v47 = vld [vmem:[#allocation36_spill] sm:$0xff] }
 0x2ac   : > { %v1479_v22 = vpack.c.bf16 %v1230_v12, %v1229_v50  ;;  %v5271_v50 = vrot.slane %v4088_v3, 7  ;;  %v1232_v32 = vmul.f32 %v4219_v38, %v993_v14  ;;  %v991_v38 = vsel %vm984_vm5, %v974_v4, %v975_v40  ;;  %v5274_v14 = vld [vmem:[#allocation60_spill] sm:$0xff] }
 0x2ad   : > { %v958_v58 = vrot.slane %v5274_v14, 7 }
 0x2ae   : > { %1495 = vst.msk [vmem:[#allocation2 + $0x58] sm:$0xff] %vm337_vm1, %v1479_v22  ;;  %v1012_v12 = vsel %vm984_vm5, %v5271_v50, %v954_v56  ;;  %v1231_v22 = vmul.f32 %v4217_v23, %v994_v27  ;;  %v1010_v56 = vsel %vm984_vm5, %v955_v5, %v956_v25  ;;  %v992_v50 = vsel %vm984_vm5, %v973_v18, %v974_v4  ;;  %v5275_v5 = vld [vmem:[#allocation30_spill] sm:$0xff] }
 0x2af   : > { %v1213_v52 = vmul.f32 %v4164_v36, %v1012_v12  ;;  %v1215_v61 = vmul.f32 %v5272_v47, %v1010_v56  ;;  %v5273_v36 = vld [vmem:[#allocation37_spill] sm:$0xff]  ;;  %v1233_v23 = vmul.f32 %v4377_v9, %v992_v50  ;;  %v976_v19 = vrot.slane %v5275_v5, 7  ;;  %v1197_v50 = vpop.permute.xlu0 %1196 }
 0x2b0   : > { %v1216_v12 = vmul.f32 %v5273_v36, %v1009_v60  ;;  %v1480_v27 = vpack.c.bf16 %v1232_v32, %v1231_v22  ;;  %v1234_v18 = vmul.f32 %v4379_v39, %v991_v38  ;;  %v5277_v56 = vld [vmem:[#allocation33_spill] sm:$0xff]  ;;  %v1008_v9 = vsel %vm984_vm5, %v957_v31, %v958_v58  ;;  %v1192_v60 = vpop.permute.xlu1 %1191 }
 0x2b1   : > { %v1471_v57 = vpack.c.bf16 %v1214_v44, %v1213_v52  ;;  %v5276_v44 = vld [vmem:[#allocation32_spill] sm:$0xff]  ;;  %v978_v47 = vrot.slane %v5277_v56, 7  ;;  %v5278_v32 = vld [vmem:[#allocation61_spill] sm:$0xff] }
 0x2b2   : > { %v1472_v25 = vpack.c.bf16 %v1216_v12, %v1215_v61  ;;  %v977_v52 = vrot.slane %v5276_v44, 7  ;;  %1496 = vst.msk [vmem:[#allocation2 + $0x60] sm:$0xff] %vm337_vm1, %v1480_v27  ;;  %v5279_v4 = vrot.slane %v5278_v32, 7  ;;  %v5280_v39 = vld [vmem:[#allocation29_spill] sm:$0xff]  ;;  %v1481_v36 = vpack.c.bf16 %v1234_v18, %v1233_v23 }
 0x2b3   : > { %1487 = vst.msk [vmem:[#allocation2 + $0x18] sm:$0xff] %vm337_vm1, %v1471_v57  ;;  %v990_v57 = vsel %vm984_vm5, %v975_v40, %v976_v19  ;;  %v979_v61 = vrot.slane %v5280_v39, 7  ;;  %v1217_v12 = vmul.f32 %v1092_v28, %v1008_v9  ;;  %v5281_v40 = vld [vmem:[#allocation66_spill] sm:$0xff]  ;;  %v1511_v18 = vpack.c.bf16 %v4180_v21, %v4140_v2 }
 0x2b4   : > { %v1007_v22 = vsel %vm984_vm5, %v958_v58, %v5279_v4  ;;  %1488 = vst.msk [vmem:[#allocation2 + $0x20] sm:$0xff] %vm337_vm1, %v1472_v25  ;;  %v1235_v38 = vmul.f32 %v1182_v7, %v990_v57  ;;  %v989_v31 = vsel %vm984_vm5, %v976_v19, %v977_v52  ;;  %v988_v41 = vsel %vm984_vm5, %v977_v52, %v978_v47  ;;  %v5282_v4 = vld [vmem:[#allocation68_spill] sm:$0xff]  ;;  %v5283_v7 = vld [vmem:[#allocation63_spill] sm:$0xff] }
 0x2b5   : > { %v1218_v27 = vmul.f32 %v1097_v35, %v1007_v22  ;;  %v987_v58 = vsel %vm984_vm5, %v978_v47, %v979_v61  ;;  %v1507_v37 = vpack.c.bf16 %v5282_v4, %v5281_v40  ;;  %1497 = vst.msk [vmem:[#allocation2 + $0x68] sm:$0xff] %vm337_vm1, %v1481_v36  ;;  %v1236_v25 = vmul.f32 %v1187_v26, %v989_v31  ;;  %v5284_v35 = vld [vmem:[#allocation64_spill] sm:$0xff]  ;;  %v5286_v26 = vld [vmem:[#allocation67_spill] sm:$0xff]  ;;  %v5294_v36 = vld [vmem:[#allocation53_spill] sm:$0xff] }
 0x2b6   : > { %v1237_v23 = vmul.f32 %v1192_v60, %v988_v41  ;;  %v1238_v28 = vmul.f32 %v1197_v50, %v987_v58  ;;  %v1506_v19 = vpack.c.bf16 %v5284_v35, %v5283_v7  ;;  %v1512_v9 = vpack.c.bf16 %v4168_v13, %v4150_v15  ;;  %v5285_v41 = vld [vmem:[#allocation55_spill] sm:$0xff] }
 0x2b7   : > { %v1473_v34 = vpack.c.bf16 %v1218_v27, %v1217_v12  ;;  %1545 = vrot.lane.b32.xlu0 %v1507_v37, %s3176_s18  ;;  %v1482_v52 = vpack.c.bf16 %v1236_v25, %v1235_v38  ;;  %v1510_v22 = vpack.c.bf16 %v5286_v26, %v5285_v41  ;;  %v1513_v37 = vpack.c.bf16 %v4183_v24, %v4171_v54  ;;  %v5287_v54 = vld [vmem:[#allocation69_spill] sm:$0xff]  ;;  %v5289_v24 = vld [vmem:[#allocation34_spill] sm:$0xff]  ;;  %v4578_v38 = vld [vmem:[%s5047_s5] sm:$0xff]  }
 0x2b8   : > { %v1483_v47 = vpack.c.bf16 %v1238_v28, %v1237_v23  ;;  %1543 = vrot.lane.b32.xlu1 %v1506_v19, %s3176_s18  ;;  %v1503_v57 = vpack.c.bf16 %v4095_v11, %v4092_v0  ;;  %v1504_v2 = vpack.c.bf16 %v4103_v53, %v4100_v62  ;;  %v1514_v13 = vpack.c.bf16 %v5276_v44, %v5275_v5  ;;  %v5288_v0 = vld [vmem:[#allocation50_spill] sm:$0xff]  ;;  %v5290_v5 = vld [vmem:[#allocation52_spill] sm:$0xff]  ;;  %v5291_v44 = vld [vmem:[#allocation51_spill] sm:$0xff] }
 0x2b9   : > { %1489 = vst.msk [vmem:[#allocation2 + $0x28] sm:$0xff] %vm337_vm1, %v1473_v34  ;;  %1498 = vst.msk [vmem:[#allocation2 + $0x70] sm:$0xff] %vm337_vm1, %v1482_v52  ;;  %v1505_v21 = vpack.c.bf16 %v5278_v32, %v5274_v14  ;;  %v1515_v15 = vpack.c.bf16 %v5280_v39, %v5277_v56  ;;  %v1508_v11 = vpack.c.bf16 %v5288_v0, %v5287_v54  ;;  %v980_v62 = vrot.slane %v5289_v24, 7  ;;  %v5295_v12 = vld [vmem:[#allocation58_spill] sm:$0xff]  ;;  %v5296_v31 = vld [vmem:[#allocation7_spill] sm:$0xff] }
 0x2ba   : > { %1499 = vst.msk [vmem:[#allocation2 + $0x78] sm:$0xff] %vm337_vm1, %v1483_v47  ;;  %v1253_v34 = vrot.slane %v5281_v40, 1  ;;  %v1254_v14 = vrot.slane %v5282_v4, 1  ;;  %v5292_v32 = vpack.c.bf16 %v5290_v5, %v5291_v44  ;;  %v5293_v60 = vrot.slane %v5287_v54, 1  ;;  %v5297_v40 = vld [vmem:[#allocation9_spill] sm:$0xff]  ;;  %2841 = vmatprep.subr.bf16.mxu1 %v4578_v38  ;;  %v5298_v25 = vld [vmem:[#allocation59_spill] sm:$0xff] }
 0x2bb   : > { %1551 = vrot.lane.b32.xlu0 %v1510_v22, %s3176_s18  ;;  %v4557_v53 = vsel %vm984_vm5, %v979_v61, %v980_v62  ;;  %v1501_v27 = vpack.c.bf16 %v5295_v12, %v5294_v36  ;;  %v1502_v23 = vpack.c.bf16 %v4088_v3, %v5298_v25  ;;  %2844 = vmatpush3.bf16.msra.mxu1 %v4578_v38  ;;  %v1252_v28 = vrot.slane %v5284_v35, 1  ;;  %v4592_v19 = vld [vmem:[%s5047_s5 + $0x8] sm:$0xff]   ;;  %v4607_v47 = vld [vmem:[%s5047_s5 + $0x10] sm:$0xff]   ;;  %v5301_v26 = vld [vmem:[#allocation8_spill] sm:$0xff] }
 0x2bc   : > { %1547 = vrot.lane.b32.xlu1 %v1508_v11, %s3176_s18  ;;  %v1291_v50 = vsel %vm1273_vm4, %v1254_v14, %v5293_v60  ;;  %v1292_v61 = vsel %vm1273_vm4, %v1253_v34, %v1254_v14  ;;  %2842 = vmatprep.subr.bf16.mxu1 %v4592_v19  ;;  %v5299_v35 = vrot.slane %v5283_v7, 1  ;;  %v5302_v7 = vpack.c.bf16 %v4350_v20, %v4397_v10  ;;  %v2970_v10 = vld [vmem:[%s5047_s5 + $0x18] sm:$0xff]   ;;  %v2971_v54 = vld [vmem:[%s5047_s5 + $0x20] sm:$0xff]   ;;  %v2972_v0 = vld [vmem:[%s5047_s5 + $0x28] sm:$0xff]  }
 0x2bd   : > { %v1446_v58 = vmul.f32 %v5296_v31, %v1292_v61  ;;  %v1447_v4 = vmul.f32 %v5297_v40, %v1291_v50  ;;  %v1293_v3 = vsel %vm1273_vm4, %v1252_v28, %v1253_v34  ;;  %2724 = vmatprep.subr.bf16.mxu0 %v2970_v10  ;;  %v5313_v14 = vpack.c.bf16 %v4418_v43, %v4415_v29  ;;  %v5322_v50 = vld [vmem:[#allocation65_spill] sm:$0xff]  ;;  %v3106_v31 = vld [vmem:[%s5049_s7 + $0xf0] sm:$0xff] }
 0x2be   : > { %v1294_v52 = vsel %vm1273_vm4, %v5299_v35, %v1252_v28  ;;  %v1445_v22 = vmul.f32 %v5301_v26, %v1293_v3  ;;  %2725 = vmatpush3.bf16.msra.mxu0 %v2970_v10  ;;  %v5314_v5 = vpack.c.bf16 %v4372_v17, %v4369_v63  ;;  %v5316_v44 = vpack.c.bf16 %v4394_v42, %v4391_v1  ;;  %v5321_v42 = vld [vmem:[#allocation43_spill] sm:$0xff] }
 0x2bf   : > { %1553 = vrot.lane.b32.xlu0 %v1511_v18, %s3176_s18  ;;  %v1604_v18 = vpack.c.bf16 %v1447_v4, %v1446_v58  ;;  %2845 = vmatpush3.bf16.msra.mxu1 %v4592_v19  ;;  %v5318_v29 = vrot.slane %v5294_v36, 1  ;;  %v5319_v63 = vrot.slane %v5289_v24, 1  ;;  %v5320_v1 = vpack.c.bf16 %v4430_v49, %v4427_v46  ;;  %v3105_v36 = vld [vmem:[%s5049_s7 + $0xf8] sm:$0xff]  ;;  %v5326_v49 = vld [vmem:[#allocation12_spill] sm:$0xff] }
 0x2c0   : > { %1549 = vrot.lane.b32.xlu1 %v5292_v32, %s3176_s18  ;;  %2843 = vmatprep.subr.bf16.mxu1 %v4607_v47  ;;  %v5317_v32 = vpack.c.bf16 %v4382_v51, %v4375_v48  ;;  %v5323_v51 = vld [vmem:[#allocation38_spill] sm:$0xff]  ;;  %v5325_v46 = vmov 1  }
 0x2c1   : > { %2726 = vmatprep.subr.bf16.mxu0 %v2971_v54  ;;  %v5324_v61 = vpack.c.bf16 %v4388_v8, %v5323_v51 }
 0x2c2   : > { %2727 = vmatpush3.bf16.msra.mxu0 %v2971_v54  ;;  %v2973_v54 = vld [vmem:[%s5047_s5 + $0x38] sm:$0xff]  }
 0x2c3   : > { %1555 = vrot.lane.b32.xlu0 %v1512_v9, %s3176_s18  ;;  %v5300_v9 = vld [vmem:[#allocation6_spill] sm:$0xff]  ;;  %2846 = vmatpush3.bf16.msra.mxu1 %v4607_v47 }
 0x2c4   : > { %1533 = vrot.lane.b32.xlu1 %v1501_v27, %s3176_s18  ;;  %v1444_v41 = vmul.f32 %v5300_v9, %v1294_v52  ;;  %2728 = vmatprep.subr.bf16.mxu0 %v2972_v0  ;;  %v5327_v27 = vld [vmem:[#allocation39_spill] sm:$0xff] }
 0x2c5   : > { %v5328_v8 = vpack.c.bf16 %v5326_v49, %v5327_v27 }
 0x2c6   : > { %v1603_v20 = vpack.c.bf16 %v1445_v22, %v1444_v41  ;;  %2729 = vmatpush3.bf16.msra.mxu0 %v2972_v0 }
 0x2c7   : > { %1557 = vrot.lane.b32.xlu0 %v1513_v37, %s3176_s18  ;;  %v4621_v37 = vld [vmem:[%s5047_s5 + $0x30] sm:$0xff]   ;;  %2762 = vmatprep.subr.bf16.mxu0 %v4578_v38 }
 0x2c8   : > { %1535 = vrot.lane.b32.xlu1 %v1502_v23, %s3176_s18  ;;  %2800 = vmatprep.subr.bf16.mxu1 %v4621_v37 }
 0x2cb   : > { %1642 = vrot.lane.b32.xlu0 %v1604_v18, %s3177_s23 }
 0x2cc   : > { %1537 = vrot.lane.b32.xlu1 %v1503_v57, %s3176_s18  ;;  %v5303_v57 = vmov 0  }
 0x2cd   : > { %1467 = vst.msk [vmem:[#allocation2] sm:$0xff] %vm1466_vm6, %v5303_v57  ;;  %1468 = vst.msk [vmem:[#allocation2 + $0x88] sm:$0xff] %vm1466_vm6, %v5303_v57 }
 0x2cf   : > { %1644 = vrot.lane.b32.xlu0 %v5302_v7, %s3177_s23 }
 0x2d0   : > { %1539 = vrot.lane.b32.xlu1 %v1504_v2, %s3176_s18  ;;  %v5304_v2 = vpack.c.bf16 %v4400_v45, %v4362_v30  ;;  %v5306_v30 = vld [vmem:[#allocation57_spill] sm:$0xff]  ;;  %v5307_v45 = vld [vmem:[#allocation56_spill] sm:$0xff] }
 0x2d1   : > { %v5308_v11 = vpack.c.bf16 %v5306_v30, %v5307_v45 }
 0x2d3   : > { %1559 = vrot.lane.b32.xlu0 %v1514_v13, %s3176_s18  ;;  %v5305_v13 = vpack.c.bf16 %v4406_v33, %v4403_v55  ;;  %v5310_v55 = vld [vmem:[#allocation35_spill] sm:$0xff]  ;;  %v5311_v33 = vld [vmem:[#allocation62_spill] sm:$0xff] }
 0x2d4   : > { %1640 = vrot.lane.b32.xlu1 %v1603_v20, %s3177_s23  ;;  %v5312_v34 = vpack.c.bf16 %v5310_v55, %v5311_v33 }
 0x2d7   : > { %1648 = vrot.lane.b32.xlu0 %v5304_v2, %s3177_s23 }
 0x2d8   : > { %1541 = vrot.lane.b32.xlu1 %v1505_v21, %s3176_s18  ;;  %v5309_v21 = vpack.c.bf16 %v4412_v16, %v4409_v6  ;;  %v5315_v6 = vld [vmem:[#allocation54_spill] sm:$0xff] }
 0x2d9   : > { %v1272_v16 = vrot.slane %v5315_v6, 1  ;;  %v1516_v58 = vpack.c.bf16 %v5315_v6, %v5289_v24  ;;  %v5329_v51 = vrot.slane %v5315_v6, 7  ;;  %v1695_v24 = vld [vmem:[#allocation2] sm:$0xff] }
 0x2db   : > { %1650 = vrot.lane.b32.xlu0 %v5305_v13, %s3177_s23  ;;  %v1305_v43 = vsel %vm1273_vm4, %v1272_v16, %v5318_v29  ;;  %v1274_v17 = vsel %vm1273_vm4, %v5319_v63, %v1272_v16 }
 0x2dc   : > { %1646 = vrot.lane.b32.xlu1 %v5308_v11, %s3177_s23  ;;  %v1465_v60 = vmul.f32 %v5321_v42, %v1305_v43  ;;  %v1464_v48 = vmul.f32 %v5322_v50, %v1274_v17  ;;  %v2974_v11 = vld [vmem:[%s5047_s5 + $0x40] sm:$0xff]  }
 0x2de   : > { %v1613_v12 = vpack.c.bf16 %v1465_v60, %v1464_v48 }
 0x2df   : > { %1652 = vrot.lane.b32.xlu0 %v5309_v21, %s3177_s23 }
 0x2e0   : > { %1630 = vrot.lane.b32.xlu1 %v5312_v34, %s3177_s23 }
 0x2e3   : > { %1654 = vrot.lane.b32.xlu0 %v5313_v14, %s3177_s23 }
 0x2e4   : > { %1632 = vrot.lane.b32.xlu1 %v5314_v5, %s3177_s23 }
 0x2e7   : > { %1638 = vrot.lane.b32.xlu0 %v5316_v44, %s3177_s23 }
 0x2e8   : > { %1634 = vrot.lane.b32.xlu1 %v5317_v32, %s3177_s23 }
 0x2eb   : > { %1658 = vrot.lane.b32.xlu0 %v5320_v1, %s3177_s23 }
 0x2ec   : > { %1636 = vrot.lane.b32.xlu1 %v5324_v61, %s3177_s23 }
 0x2ef   : > { %1206 = vperm.xlu0 %2963, %v3105_v36  }
 0x2f0   : > { %1561 = vrot.lane.b32.xlu1 %v1515_v15, %s3176_s18 }
 0x2f3   : > { %1660 = vrot.lane.b32.xlu0 %v1613_v12, %s3177_s23 }
 0x2f4   : > { %2965 = vset.pattern.permute.xlu0 %v5325_v46  ;;  %1656 = vrot.lane.b32.xlu1 %v5328_v8, %s3177_s23  ;;  %s3107_s23 = scalar_lea.vmem %s4991_s24, 4096 }
 0x2f5   : > { %p3108_p11 = scmp.ne.s32.totalorder %s4991_s24, %s3107_s23  ;;  %p3115_p1 = scmp.lt.s32.totalorder %s3113_s17, %s3107_s23 }
 0x2f7   : > { %p3109_p12 = pnand %p3108_p11, %p3264_p5  ;;  %p3116_p2 = por %p3115_p1, %p3114_p0 }
 0x2f8   : > { %1201 = vperm.xlu1 %2964, %v3106_v31  }
 0x2f9   : > { %p3110_p13 = pneg %p3109_p12 }
 0x2fb   : > { %p3117_p3 = pnand %p3116_p2, %p3110_p13 }
 0x2fc   : > { %1563 = vrot.lane.b32.xlu1 %v1516_v58, %s3176_s18  ;;  %s5001_s18 = scalar_lea.sflag [#allocation4], %s296_s13 }
 0x329   : > { %v1546_v56 = vpop.permute.xlu0 %1545 }
 0x32a   : > { %1588 = vst.msk [vmem:[#allocation2 + $0x38] sm:$0xff] %vm1581_vm7, %v1546_v56  ;;  %v1544_v39 = vpop.permute.xlu1 %1543 }
 0x32b   : > { %1587 = vst.msk [vmem:[#allocation2 + $0x30] sm:$0xff] %vm1581_vm7, %v1544_v39 }
 0x32d   : > { %v1552_v15 = vpop.permute.xlu0 %1551 }
 0x32e   : > { %1591 = vst.msk [vmem:[#allocation2 + $0x50] sm:$0xff] %vm1581_vm7, %v1552_v15  ;;  %v1548_v40 = vpop.permute.xlu1 %1547 }
 0x32f   : > { %1589 = vst.msk [vmem:[#allocation2 + $0x40] sm:$0xff] %vm1581_vm7, %v1548_v40 }
 0x331   : > { %v1554_v4 = vpop.permute.xlu0 %1553 }
 0x332   : > { %1592 = vst.msk [vmem:[#allocation2 + $0x58] sm:$0xff] %vm1581_vm7, %v1554_v4  ;;  %v1550_v25 = vpop.permute.xlu1 %1549 }
 0x333   : > { %1590 = vst.msk [vmem:[#allocation2 + $0x48] sm:$0xff] %vm1581_vm7, %v1550_v25 }
 0x335   : > { %v1556_v23 = vpop.permute.xlu0 %1555 }
 0x336   : > { %1593 = vst.msk [vmem:[#allocation2 + $0x60] sm:$0xff] %vm1581_vm7, %v1556_v23  ;;  %v1534_v28 = vpop.permute.xlu1 %1533 }
 0x337   : > { %1582 = vst.msk [vmem:[#allocation2 + $0x8] sm:$0xff] %vm1581_vm7, %v1534_v28 }
 0x339   : > { %v1558_v18 = vpop.permute.xlu0 %1557 }
 0x33a   : > { %1594 = vst.msk [vmem:[#allocation2 + $0x68] sm:$0xff] %vm1581_vm7, %v1558_v18  ;;  %v1536_v3 = vpop.permute.xlu1 %1535 }
 0x33b   : > { %1583 = vst.msk [vmem:[#allocation2 + $0x10] sm:$0xff] %vm1581_vm7, %v1536_v3 }
 0x33d   : > { %v1643_v35 = vpop.permute.xlu0 %1642 }
 0x33e   : > { %1685 = vst.msk [vmem:[#allocation2 + $0x38] sm:$0xff] %vm1678_vm8, %v1643_v35  ;;  %v1538_v52 = vpop.permute.xlu1 %1537 }
 0x33f   : > { %1584 = vst.msk [vmem:[#allocation2 + $0x18] sm:$0xff] %vm1581_vm7, %v1538_v52 }
 0x341   : > { %v1645_v9 = vpop.permute.xlu0 %1644 }
 0x342   : > { %1686 = vst.msk [vmem:[#allocation2 + $0x40] sm:$0xff] %vm1678_vm8, %v1645_v9  ;;  %v1540_v41 = vpop.permute.xlu1 %1539 }
 0x343   : > { %1585 = vst.msk [vmem:[#allocation2 + $0x20] sm:$0xff] %vm1581_vm7, %v1540_v41 }
 0x345   : > { %v1560_v26 = vpop.permute.xlu0 %1559  ;;  %v4743_v13 = vld [vmem:[#allocation2 + $0x38] sm:$0xff] }
 0x346   : > { %1595 = vst.msk [vmem:[#allocation2 + $0x70] sm:$0xff] %vm1581_vm7, %v1560_v26  ;;  %v1641_v22 = vpop.permute.xlu1 %1640 }
 0x347   : > { %1684 = vst.msk [vmem:[#allocation2 + $0x30] sm:$0xff] %vm1678_vm8, %v1641_v22 }
 0x349   : > { %v1649_v7 = vpop.permute.xlu0 %1648  ;;  %v4747_v0 = vld [vmem:[#allocation2 + $0x40] sm:$0xff] }
 0x34a   : > { %1688 = vst.msk [vmem:[#allocation2 + $0x50] sm:$0xff] %vm1678_vm8, %v1649_v7  ;;  %v1542_v57 = vpop.permute.xlu1 %1541 }
 0x34b   : > { %1586 = vst.msk [vmem:[#allocation2 + $0x28] sm:$0xff] %vm1581_vm7, %v1542_v57 }
 0x34d   : > { %v1651_v20 = vpop.permute.xlu0 %1650 }
 0x34e   : > { %1689 = vst.msk [vmem:[#allocation2 + $0x58] sm:$0xff] %vm1678_vm8, %v1651_v20  ;;  %v1647_v10 = vpop.permute.xlu1 %1646  ;;  %v4735_v2 = vld [vmem:[#allocation2 + $0x30] sm:$0xff] }
 0x34f   : > { %1687 = vst.msk [vmem:[#allocation2 + $0x48] sm:$0xff] %vm1678_vm8, %v1647_v10  ;;  %2780 = vmatprep.mubr.msk.bf16.mxu1 %vm1466_vm6, %v4735_v2 }
 0x350   : > { %2781 = vmatmul.mubr.msk.bf16.vlgmr.msra.gmra.mrb[0].mxu1 %vm1466_vm6, %v4743_v13 }
 0x351   : > { %v1653_v30 = vpop.permute.xlu0 %1652  ;;  %2801 = vmatpush3.bf16.msra.mxu1 %v4621_v37  ;;  %2784 = vmatprep.mubr.msk.bf16.mxu1 %vm1466_vm6, %v4747_v0  ;;  %v4763_v37 = vld [vmem:[#allocation2 + $0x50] sm:$0xff] }
 0x352   : > { %1690 = vst.msk [vmem:[#allocation2 + $0x60] sm:$0xff] %vm1678_vm8, %v1653_v30  ;;  %v1631_v45 = vpop.permute.xlu1 %1630  ;;  %2802 = vmatprep.subr.bf16.mxu1 %v2973_v54 }
 0x353   : > { %1679 = vst.msk [vmem:[#allocation2 + $0x8] sm:$0xff] %vm1678_vm8, %v1631_v45 }
 0x355   : > { %v1655_v21 = vpop.permute.xlu0 %1654  ;;  %2803 = vmatpush3.bf16.msra.mxu1 %v2973_v54  ;;  %v1706_v32 = vld [vmem:[#allocation2 + $0x58] sm:$0xff] }
 0x356   : > { %1691 = vst.msk [vmem:[#allocation2 + $0x68] sm:$0xff] %vm1678_vm8, %v1655_v21  ;;  %v1633_v55 = vpop.permute.xlu1 %1632  ;;  %v4758_v33 = vld [vmem:[#allocation2 + $0x48] sm:$0xff]  ;;  %2804 = vmatprep.subr.bf16.mxu1 %v2974_v11 }
 0x357   : > { %1680 = vst.msk [vmem:[#allocation2 + $0x10] sm:$0xff] %vm1678_vm8, %v1633_v55 }
 0x358   : > { %2785 = vmatmul.mubr.msk.bf16.gmra.mrb[4].mxu1 %vm1466_vm6, %v4758_v33 }
 0x359   : > { %v1639_v34 = vpop.permute.xlu0 %1638  ;;  %2788 = vmatprep.mubr.msk.bf16.mxu1 %vm1466_vm6, %v4763_v37  ;;  %2805 = vmatpush3.bf16.msra.mxu1 %v2974_v11  ;;  %v1707_v29 = vld [vmem:[#allocation2 + $0x60] sm:$0xff] }
 0x35a   : > { %1683 = vst.msk [vmem:[#allocation2 + $0x28] sm:$0xff] %vm1678_vm8, %v1639_v34  ;;  %v1635_v14 = vpop.permute.xlu1 %1634  ;;  %v4768_v5 = vld [vmem:[#allocation2 + $0x8] sm:$0xff] }
 0x35b   : > { %1681 = vst.msk [vmem:[#allocation2 + $0x18] sm:$0xff] %vm1678_vm8, %v1635_v14  ;;  %2730 = vmatprep.mubr.msk.bf16.mxu0 %vm1466_vm6, %v4768_v5 }
 0x35d   : > { %v1659_v17 = vpop.permute.xlu0 %1658  ;;  %v1708_v60 = vld [vmem:[#allocation2 + $0x68] sm:$0xff] }
 0x35e   : > { %v1637_v16 = vpop.permute.xlu1 %1636  ;;  %v4773_v44 = vld [vmem:[#allocation2 + $0x10] sm:$0xff] }
 0x35f   : > { %1682 = vst.msk [vmem:[#allocation2 + $0x20] sm:$0xff] %vm1678_vm8, %v1637_v16  ;;  %2731 = vmatmul.mubr.msk.bf16.vlgmr.msra.gmra.mrb[4].mxu0 %vm1466_vm6, %v4773_v44 }
 0x360   : > { %2763 = vmatpush3.bf16.msra.mxu0 %v4578_v38  ;;  %2789 = vmatmul.mubr.msk.bf16.gmra.mrb[8].mxu1 %vm1466_vm6, %v1706_v32 }
 0x361   : > { %2792 = vmatprep.mubr.msk.bf16.mxu1 %vm1466_vm6, %v1707_v29  ;;  %2764 = vmatprep.subr.bf16.mxu0 %v4592_v19  ;;  %v1700_v42 = vld [vmem:[#allocation2 + $0x28] sm:$0xff] }
 0x362   : > { %v1562_v43 = vpop.permute.xlu1 %1561  ;;  %v1698_v63 = vld [vmem:[#allocation2 + $0x18] sm:$0xff] }
 0x363   : > { %1596 = vst.msk [vmem:[#allocation2 + $0x78] sm:$0xff] %vm1581_vm7, %v1562_v43  ;;  %2734 = vmatprep.mubr.msk.bf16.mxu0 %vm1466_vm6, %v1698_v63 }
 0x364   : > { %1693 = vst.msk [vmem:[#allocation2 + $0x78] sm:$0xff] %vm1678_vm8, %v1659_v17  ;;  %2765 = vmatpush3.bf16.msra.mxu0 %v4592_v19 }
 0x365   : > { %2766 = vmatprep.subr.bf16.mxu0 %v4607_v47 }
 0x366   : > { %v1657_v38 = vpop.permute.xlu1 %1656  ;;  %v1699_v1 = vld [vmem:[#allocation2 + $0x20] sm:$0xff] }
 0x367   : > { %1692 = vst.msk [vmem:[#allocation2 + $0x70] sm:$0xff] %vm1678_vm8, %v1657_v38  ;;  %2735 = vmatmul.mubr.msk.bf16.gmra.mrb[8].mxu0 %vm1466_vm6, %v1699_v1 }
 0x368   : > { %2738 = vmatprep.mubr.msk.bf16.mxu0 %vm1466_vm6, %v1700_v42  ;;  %2793 = vmatmul.mubr.msk.bf16.gmra.mrb[12].mxu1 %vm1466_vm6, %v1708_v60 }
 0x369   : > { %2767 = vmatpush3.bf16.msra.mxu0 %v4607_v47  ;;  %v985_v47 = vsel %vm984_vm5, %v980_v62, %v5329_v51 }
 0x36b   : > { %v1710_v19 = vld [vmem:[#allocation2 + $0x78] sm:$0xff] }
 0x36e   : > { %v1709_v50 = vld [vmem:[#allocation2 + $0x70] sm:$0xff]  ;;  %v1207_v48 = vpop.permute.xlu0 %1206 }
 0x36f   : > { %2739 = vmatmul.mubr.msk.bf16.gmra.mrb[12].mxu0 %vm1466_vm6, %v4735_v2  ;;  %2796 = vmatprep.mubr.msk.bf16.mxu1 %vm1466_vm6, %v1709_v50  ;;  %v1240_v36 = vmul.f32 %v1207_v48, %v985_v47 }
 0x370   : > { %2742 = vmatprep.mubr.msk.bf16.mxu0 %vm1466_vm6, %v4743_v13  ;;  %2797 = vmatmul.mubr.msk.bf16.gmra.mrb[16].mxu1 %vm1466_vm6, %v1710_v19 }
 0x371   : > { %2806 = vmatprep.mubr.msk.bf16.mxu1 %vm1466_vm6, %v4773_v44 }
 0x372   : > { %v1661_v59 = vpop.permute.xlu0 %1660 }
 0x377   : > { %v1202_v61 = vpop.permute.xlu1 %1201  ;;  %2743 = vmatmul.mubr.msk.bf16.gmra.mrb[16].mxu0 %vm1466_vm6, %v4747_v0 }
 0x378   : > { %v1239_v12 = vmul.f32 %v1202_v61, %v4557_v53  ;;  %2746 = vmatprep.mubr.msk.bf16.mxu0 %vm1466_vm6, %v4758_v33  ;;  %2807 = vmatmul.mubr.msk.bf16.vlgmr.msra.gmra.mrb[20].mxu1 %vm1466_vm6, %v1698_v63  ;;  %v2149_v53 = vld [vmem:[#allocation2 + $0x88] sm:$0xff] }
 0x379   : > { %2810 = vmatprep.mubr.msk.bf16.mxu1 %vm1466_vm6, %v1699_v1 }
 0x37a   : > { %v1484_v6 = vpack.c.bf16 %v1240_v36, %v1239_v12 }
 0x37b   : > { %v1564_v46 = vpop.permute.xlu1 %1563 }
 0x37c   : > { %1500 = vst.msk [vmem:[#allocation2 + $0x80] sm:$0xff] %vm337_vm1, %v1484_v6 }
 0x37d   : > { %1597 = vst.msk [vmem:[#allocation2 + $0x80] sm:$0xff] %vm1581_vm7, %v1564_v46 }
 0x37e   : > { %1694 = vst.msk [vmem:[#allocation2 + $0x80] sm:$0xff] %vm1678_vm8, %v1661_v59 }
 0x37f   : > { %2747 = vmatmul.mubr.msk.bf16.gmra.mrb[20].mxu0 %vm1466_vm6, %v4763_v37 }
 0x380   : > { %2750 = vmatprep.mubr.msk.bf16.mxu0 %vm1466_vm6, %v1706_v32  ;;  %2811 = vmatmul.mubr.msk.bf16.gmra.mrb[24].mxu1 %vm1466_vm6, %v1700_v42 }
 0x381   : > { %2814 = vmatprep.mubr.msk.bf16.mxu1 %vm1466_vm6, %v4735_v2 }
 0x385   : > { %v1717_v62 = vld [vmem:[#allocation2 + $0x80] sm:$0xff] }
 0x387   : > { %2751 = vmatmul.mubr.msk.bf16.gmra.mrb[24].mxu0 %vm1466_vm6, %v1707_v29 }
 0x388   : > { %2754 = vmatprep.mubr.msk.bf16.mxu0 %vm1466_vm6, %v1708_v60  ;;  %2815 = vmatmul.mubr.msk.bf16.gmra.mrb[28].mxu1 %vm1466_vm6, %v4743_v13  ;;  %v4888_v13 = vld [vmem:[%s5048_s6] ss:$0 sm:$0xff] }
 0x389   : > { %2818 = vmatprep.mubr.msk.bf16.mxu1 %vm1466_vm6, %v4747_v0 }
 0x38f   : > { %2755 = vmatmul.mubr.msk.bf16.gmra.mrb[28].mxu0 %vm1466_vm6, %v1709_v50 }
 0x390   : > { %2758 = vmatprep.mubr.msk.bf16.mxu0 %vm1466_vm6, %v1710_v19  ;;  %2819 = vmatmul.mubr.msk.bf16.gmra.mrb[0].mxu1 %vm1466_vm6, %v4758_v33 }
 0x391   : > { %2822 = vmatprep.mubr.msk.bf16.mxu1 %vm1466_vm6, %v4763_v37 }
 0x397   : > { %2759 = vmatmul.mubr.msk.bf16.gmra.mrb[32].mxu0 %vm1466_vm6, %v1717_v62 }
 0x398   : > { %2823 = vmatmul.mubr.msk.bf16.gmra.mrb[4].mxu1 %vm1466_vm6, %v1706_v32  ;;  %2768 = vmatprep.mubr.msk.bf16.mxu0 %vm1466_vm6, %v1695_v24 }
 0x399   : > { %2826 = vmatprep.mubr.msk.bf16.mxu1 %vm1466_vm6, %v1707_v29 }
 0x39f   : > { %2769 = vmatmul.mubr.msk.bf16.vlgmr.msra.gmra.mrb[4].mxu0 %vm1466_vm6, %v4768_v5 }
 0x3a0   : > { %2772 = vmatprep.mubr.msk.bf16.mxu0 %vm1466_vm6, %v4773_v44  ;;  %2827 = vmatmul.mubr.msk.bf16.gmra.mrb[8].mxu1 %vm1466_vm6, %v1708_v60 }
 0x3a1   : > { %2830 = vmatprep.mubr.msk.bf16.mxu1 %vm1466_vm6, %v1709_v50 }
 0x3a7   : > { %2773 = vmatmul.mubr.msk.bf16.gmra.mrb[8].mxu0 %vm1466_vm6, %v1698_v63 }
 0x3a8   : > { %2776 = vmatprep.mubr.msk.bf16.mxu0 %vm1466_vm6, %v1699_v1  ;;  %2831 = vmatmul.mubr.msk.bf16.gmra.mrb[12].mxu1 %vm1466_vm6, %v1710_v19 }
 0x3a9   : > { %2834 = vmatprep.mubr.msk.bf16.mxu1 %vm1466_vm6, %v1717_v62 }
 0x3af   : > { %2777 = vmatmul.mubr.msk.bf16.gmra.mrb[12].mxu0 %vm1466_vm6, %v1700_v42 }
 0x3b0   : > { %2835 = vmatmul.mubr.msk.bf16.gmra.mrb[16].mxu1 %vm1466_vm6, %v2149_v53 }
 0x44a   : > { %v2744_v49 = vpop.f32.mrb[16].mxu0 }
 0x44b   : > { %v1873_v27 = vpop.f32.mrb[17].mxu0  ;;  %v4850_v8 = vpop.f32.mrb[20].mxu1 }
 0x44c   : > { %v2745_v31 = vpop.f32.mrb[18].mxu0  ;;  %v4852_v58 = vpop.f32.mrb[21].mxu1 }
 0x44d   : > { %v1876_v56 = vpop.f32.mrb[19].mxu0  ;;  %v4854_v39 = vpop.f32.mrb[22].mxu1 }
 0x44e   : > { %v4856_v15 = vpop.f32.mrb[23].mxu1 }
 0x452   : > { %v2748_v40 = vpop.f32.mrb[20].mxu0 }
 0x453   : > { %v1889_v4 = vpop.f32.mrb[21].mxu0  ;;  %v4858_v25 = vpop.f32.mrb[24].mxu1 }
 0x454   : > { %v2749_v23 = vpop.f32.mrb[22].mxu0  ;;  %v4860_v28 = vpop.f32.mrb[25].mxu1 }
 0x455   : > { %v1892_v18 = vpop.f32.mrb[23].mxu0  ;;  %v4862_v3 = vpop.f32.mrb[26].mxu1 }
 0x456   : > { %v4864_v35 = vpop.f32.mrb[27].mxu1 }
 0x45a   : > { %v2752_v52 = vpop.f32.mrb[24].mxu0 }
 0x45b   : > { %v1905_v9 = vpop.f32.mrb[25].mxu0  ;;  %v4866_v41 = vpop.f32.mrb[28].mxu1 }
 0x45c   : > { %v4868_v26 = vpop.f32.mrb[26].mxu0  ;;  %v4870_v22 = vpop.f32.mrb[29].mxu1 }
 0x45d   : > { %v4872_v7 = vpop.f32.mrb[27].mxu0  ;;  %v4874_v57 = vpop.f32.mrb[30].mxu1 }
 0x45e   : > { %v4876_v20 = vpop.f32.mrb[31].mxu1 }
 0x462   : > { %v4879_v10 = vpop.f32.mrb[28].mxu0 }
 0x463   : > { %v4883_v2 = vpop.f32.mrb[29].mxu0  ;;  %v2820_v54 = vpop.f32.mrb[0].mxu1 }
 0x464   : > { %v2859_v0 = vadd.f32 %v2820_v54, %v2744_v49  ;;  %v4890_v30 = vpop.f32.mrb[30].mxu0  ;;  %v2305_v45 = vpop.f32.mrb[1].mxu1 }
 0x465   : > { %v2860_v11 = vadd.f32 %v2305_v45, %v1873_v27  ;;  %v4892_v21 = vpop.f32.mrb[31].mxu0  ;;  %v2821_v55 = vpop.f32.mrb[2].mxu1 }
 0x466   : > { %v2437_v33 = vadd.f32 %v2859_v0, %v4888_v13  ;;  %v2861_v37 = vadd.f32 %v2821_v55, %v2745_v31  ;;  %v2308_v34 = vpop.f32.mrb[3].mxu1 }
 0x467   : > { %v2435_v14 = vadd.f32 %v2860_v11, %v4888_v13  ;;  %v2862_v5 = vadd.f32 %v2308_v34, %v1876_v56 }
 0x468   : > { %2469 = vst [vmem:[%s4896_s21 + $0x70] sm:$0xff] %v2437_v33  ;;  %v2438_v16 = vadd.f32 %v2861_v37, %v4888_v13 }
 0x469   : > { %2467 = vst [vmem:[%s4896_s21 + $0x60] sm:$0xff] %v2435_v14  ;;  %v2436_v44 = vadd.f32 %v2862_v5, %v4888_v13 }
 0x46a   : > { %2470 = vst [vmem:[%s4896_s21 + $0x78] sm:$0xff] %v2438_v16  ;;  %v4903_v32 = vpop.f32.mrb[32].mxu0 }
 0x46b   : > { %2468 = vst [vmem:[%s4896_s21 + $0x68] sm:$0xff] %v2436_v44  ;;  %v4906_v29 = vpop.f32.mrb[33].mxu0  ;;  %v2824_v43 = vpop.f32.mrb[4].mxu1 }
 0x46c   : > { %v2863_v63 = vadd.f32 %v2824_v43, %v2748_v40  ;;  %v4908_v17 = vpop.f32.mrb[34].mxu0  ;;  %v2321_v38 = vpop.f32.mrb[5].mxu1 }
 0x46d   : > { %v2864_v1 = vadd.f32 %v2321_v38, %v1889_v4  ;;  %v4910_v42 = vpop.f32.mrb[35].mxu0  ;;  %v2825_v60 = vpop.f32.mrb[6].mxu1 }
 0x46e   : > { %v2441_v50 = vadd.f32 %v2863_v63, %v4888_v13  ;;  %v2865_v19 = vadd.f32 %v2825_v60, %v2749_v23  ;;  %v2324_v48 = vpop.f32.mrb[7].mxu1 }
 0x46f   : > { %v2439_v51 = vadd.f32 %v2864_v1, %v4888_v13  ;;  %v2866_v47 = vadd.f32 %v2324_v48, %v1892_v18 }
 0x470   : > { %2473 = vst [vmem:[%s4896_s21 + $0x90] sm:$0xff] %v2441_v50  ;;  %v2442_v61 = vadd.f32 %v2865_v19, %v4888_v13 }
 0x471   : > { %2471 = vst [vmem:[%s4896_s21 + $0x80] sm:$0xff] %v2439_v51  ;;  %v2440_v36 = vadd.f32 %v2866_v47, %v4888_v13 }
 0x472   : > { %2474 = vst [vmem:[%s4896_s21 + $0x98] sm:$0xff] %v2442_v61  ;;  %v2770_v12 = vpop.f32.mrb[4].mxu0 }
 0x473   : > { %2472 = vst [vmem:[%s4896_s21 + $0x88] sm:$0xff] %v2440_v36  ;;  %v2847_v6 = vadd.f32 %v4850_v8, %v2770_v12  ;;  %v2007_v46 = vpop.f32.mrb[5].mxu0  ;;  %v2828_v59 = vpop.f32.mrb[8].mxu1 }
 0x474   : > { %v2848_v24 = vadd.f32 %v4852_v58, %v2007_v46  ;;  %v2867_v62 = vadd.f32 %v2828_v59, %v2752_v52  ;;  %v2771_v53 = vpop.f32.mrb[6].mxu0  ;;  %v2337_v49 = vpop.f32.mrb[9].mxu1 }
 0x475   : > { %v2425_v27 = vadd.f32 %v2847_v6, %v4888_v13  ;;  %v2849_v31 = vadd.f32 %v4854_v39, %v2771_v53  ;;  %v2868_v56 = vadd.f32 %v2337_v49, %v1905_v9  ;;  %v2010_v40 = vpop.f32.mrb[7].mxu0  ;;  %v2829_v4 = vpop.f32.mrb[10].mxu1 }
 0x476   : > { %v2423_v8 = vadd.f32 %v2848_v24, %v4888_v13  ;;  %v2445_v23 = vadd.f32 %v2867_v62, %v4888_v13  ;;  %v2850_v58 = vadd.f32 %v4856_v15, %v2010_v40  ;;  %v2869_v18 = vadd.f32 %v2829_v4, %v4868_v26  ;;  %v2340_v52 = vpop.f32.mrb[11].mxu1 }
 0x477   : > { %2457 = vst [vmem:[%s4896_s21 + $0x10] sm:$0xff] %v2425_v27  ;;  %v2426_v39 = vadd.f32 %v2849_v31, %v4888_v13  ;;  %v2443_v9 = vadd.f32 %v2868_v56, %v4888_v13  ;;  %v2870_v54 = vadd.f32 %v2340_v52, %v4872_v7 }
 0x478   : > { %2455 = vst [vmem:[%s4896_s21] sm:$0xff] %v2423_v8  ;;  %2477 = vst [vmem:[%s4896_s21 + $0xb0] sm:$0xff] %v2445_v23  ;;  %v2424_v0 = vadd.f32 %v2850_v58, %v4888_v13  ;;  %v2446_v45 = vadd.f32 %v2869_v18, %v4888_v13 }
 0x479   : > { %2458 = vst [vmem:[%s4896_s21 + $0x18] sm:$0xff] %v2426_v39  ;;  %2475 = vst [vmem:[%s4896_s21 + $0xa0] sm:$0xff] %v2443_v9  ;;  %v2444_v15 = vadd.f32 %v2870_v54, %v4888_v13 }
 0x47a   : > { %2456 = vst [vmem:[%s4896_s21 + $0x8] sm:$0xff] %v2424_v0  ;;  %2478 = vst [vmem:[%s4896_s21 + $0xb8] sm:$0xff] %v2446_v45  ;;  %v2774_v26 = vpop.f32.mrb[8].mxu0 }
 0x47b   : > { %2476 = vst [vmem:[%s4896_s21 + $0xa8] sm:$0xff] %v2444_v15  ;;  %v2851_v11 = vadd.f32 %v4858_v25, %v2774_v26  ;;  %v2023_v55 = vpop.f32.mrb[9].mxu0  ;;  %v2832_v33 = vpop.f32.mrb[12].mxu1 }
 0x47c   : > { %v2852_v7 = vadd.f32 %v4860_v28, %v2023_v55  ;;  %v2871_v37 = vadd.f32 %v2832_v33, %v4879_v10  ;;  %v2775_v34 = vpop.f32.mrb[10].mxu0  ;;  %v2353_v14 = vpop.f32.mrb[13].mxu1 }
 0x47d   : > { %v2429_v5 = vadd.f32 %v2851_v11, %v4888_v13  ;;  %v2853_v16 = vadd.f32 %v4862_v3, %v2775_v34  ;;  %v2872_v44 = vadd.f32 %v2353_v14, %v4883_v2  ;;  %v2026_v43 = vpop.f32.mrb[11].mxu0  ;;  %v2833_v25 = vpop.f32.mrb[14].mxu1 }
 0x47e   : > { %v2427_v63 = vadd.f32 %v2852_v7, %v4888_v13  ;;  %v2449_v28 = vadd.f32 %v2871_v37, %v4888_v13  ;;  %v2854_v10 = vadd.f32 %v4864_v35, %v2026_v43  ;;  %v2873_v38 = vadd.f32 %v2833_v25, %v4890_v30  ;;  %v2356_v1 = vpop.f32.mrb[15].mxu1 }
 0x47f   : > { %2461 = vst [vmem:[%s4896_s21 + $0x30] sm:$0xff] %v2429_v5  ;;  %v2430_v3 = vadd.f32 %v2853_v16, %v4888_v13  ;;  %v2447_v2 = vadd.f32 %v2872_v44, %v4888_v13  ;;  %v2874_v60 = vadd.f32 %v2356_v1, %v4892_v21 }
 0x480   : > { %2459 = vst [vmem:[%s4896_s21 + $0x20] sm:$0xff] %v2427_v63  ;;  %2481 = vst [vmem:[%s4896_s21 + $0xd0] sm:$0xff] %v2449_v28  ;;  %v2428_v50 = vadd.f32 %v2854_v10, %v4888_v13  ;;  %v2450_v19 = vadd.f32 %v2873_v38, %v4888_v13 }
 0x481   : > { %2462 = vst [vmem:[%s4896_s21 + $0x38] sm:$0xff] %v2430_v3  ;;  %2479 = vst [vmem:[%s4896_s21 + $0xc0] sm:$0xff] %v2447_v2  ;;  %v2448_v35 = vadd.f32 %v2874_v60, %v4888_v13 }
 0x482   : > { %2460 = vst [vmem:[%s4896_s21 + $0x28] sm:$0xff] %v2428_v50  ;;  %2482 = vst [vmem:[%s4896_s21 + $0xd8] sm:$0xff] %v2450_v19  ;;  %v2778_v30 = vpop.f32.mrb[12].mxu0 }
 0x483   : > { %2480 = vst [vmem:[%s4896_s21 + $0xc8] sm:$0xff] %v2448_v35  ;;  %v2855_v48 = vadd.f32 %v4866_v41, %v2778_v30  ;;  %v2039_v51 = vpop.f32.mrb[13].mxu0  ;;  %v2836_v21 = vpop.f32.mrb[16].mxu1 }
 0x484   : > { %v2856_v47 = vadd.f32 %v4870_v22, %v2039_v51  ;;  %v2875_v61 = vadd.f32 %v2836_v21, %v4903_v32  ;;  %v2779_v36 = vpop.f32.mrb[14].mxu0  ;;  %v2369_v12 = vpop.f32.mrb[17].mxu1 }
 0x485   : > { %v2433_v6 = vadd.f32 %v2855_v48, %v4888_v13  ;;  %v2857_v46 = vadd.f32 %v4874_v57, %v2779_v36  ;;  %v2876_v59 = vadd.f32 %v2369_v12, %v4906_v29  ;;  %v2042_v24 = vpop.f32.mrb[15].mxu0  ;;  %v2837_v62 = vpop.f32.mrb[18].mxu1 }
 0x486   : > { %v2431_v41 = vadd.f32 %v2856_v47, %v4888_v13  ;;  %v2453_v22 = vadd.f32 %v2875_v61, %v4888_v13  ;;  %v2858_v32 = vadd.f32 %v4876_v20, %v2042_v24  ;;  %v2877_v53 = vadd.f32 %v2837_v62, %v4908_v17  ;;  %v2372_v57 = vpop.f32.mrb[19].mxu1 }
 0x487   : > { %2465 = vst [vmem:[%s4896_s21 + $0x50] sm:$0xff] %v2433_v6  ;;  %v2434_v29 = vadd.f32 %v2857_v46, %v4888_v13  ;;  %v2451_v49 = vadd.f32 %v2876_v59, %v4888_v13  ;;  %v2878_v27 = vadd.f32 %v2372_v57, %v4910_v42 }
 0x488   : > { %2463 = vst [vmem:[%s4896_s21 + $0x40] sm:$0xff] %v2431_v41  ;;  %2485 = vst [vmem:[%s4896_s21 + $0xf0] sm:$0xff] %v2453_v22  ;;  %v2432_v31 = vadd.f32 %v2858_v32, %v4888_v13  ;;  %v2454_v20 = vadd.f32 %v2877_v53, %v4888_v13 }
 0x489   : > { %2466 = vst [vmem:[%s4896_s21 + $0x58] sm:$0xff] %v2434_v29  ;;  %2483 = vst [vmem:[%s4896_s21 + $0xe0] sm:$0xff] %v2451_v49  ;;  %v2452_v17 = vadd.f32 %v2878_v27, %v4888_v13 }
 0x48a   : > { %2464 = vst [vmem:[%s4896_s21 + $0x48] sm:$0xff] %v2432_v31  ;;  %2486 = vst [vmem:[%s4896_s21 + $0xf8] sm:$0xff] %v2454_v20 }
 0x48b   : > { %2484 = vst [vmem:[%s4896_s21 + $0xe8] sm:$0xff] %v2452_v17 }
 0x48c   : > { %3120 = shalt.err (!%p3117_p3)
}
 0x48d   : > { %s3121_s13 = scalar_lea.hbm %s4989_s26, 4096  ;;  %s3125_s21 = scalar_lea.hbm %s5050_s8, 8192 }
 0x48e   : > { %p3122_p4 = scmp.ne.s32.totalorder %s4989_s26, %s3121_s13  ;;  %p3126_p9 = scmp.lt.u32.totalorder %s4989_s26, %s5050_s8 }
 0x48f   : > { %p3127_p10 = scmp.lt.u32.totalorder %s3125_s21, %s3121_s13  ;;  %p3129_p12 = scmp.lt.u32.totalorder %s3121_s13, %s4989_s26 }
 0x490   : > { %p3123_p7 = pnand %p3122_p4, %p3264_p5 }
 0x491   : > { %p3128_p11 = por %p3127_p10, %p3126_p9 }
 0x492   : > { %p3124_p8 = pneg %p3123_p7 }
 0x493   : > { %p3130_p13 = por %p3129_p12, %p3128_p11 }
 0x495   : > { %p3131_p0 = pnand %p3130_p13, %p3124_p8 }
 0x497   : > { %3134 = shalt.err (!%p3131_p0)
}
 0x498   : > { %s3179_s25 = smov 128   ;;  %s3180_s23 = smov 8  }
 0x499   : > { %2911 = dma.vmem_to_hbm [thread:$0]  (%p3264_p5), %s4991_s24, 4096, %s4989_s26, %s5001_s18, %s3179_s25, %s3179_s25, %s3180_s23  }
 0x49a PF: > { %p2917_p1 = scmp.ge.s32.totalorder %s3169_s30, 2  ;;  %s2516_s10 = sand.u32 1, %s3157_s27  }
 0x49b   : > { %s2517_s12 = scalar_lea.sflag [#allocation4], %s2516_s10 }
 0x49c   : > { %p2914_p2 = pnand %p2917_p1, %p3268_p6 }
 0x49e   : > { %3152 = dma.done.wait (!%p2914_p2), %s2517_s12, 4096  }
 0x49f   : > { %3154 = vsyncadd (!%p2914_p2), %s2517_s12, 4294963200  ;;  %p18_p3 = scmp.ge.s32.totalorder %s3251_s11, 4   ;;  %s5330_s27 = smov %s3161_s28 }
 0x4a0   : > { %s5331_s28 = smov %s3165_s29  ;;  %s5332_s29 = smov %s3262_s14 }
 0x4a1   : > { %s5333_s30 = smov %s3251_s11  ;;  %20 = sbr.rel (!%p18_p3) target bundleno = 3 (0x3), region = 89 }
 0x4a8   :  { %2522 = vsyncpa [#allocation4], 1 }
 0x4a9   :  { %2524 = vsyncpa [#allocation4 + $0x1], 1 }

</bundles_post_ra>
